<compile_context>
chip_gen: v7x
topology: tpu7x:2x2x1
jax: 0.10.0
libtpu: 0.0.40
codegen_flags: <defaults>
</compile_context>

<pallas_src>
import jax
import jax.numpy as jnp
from jax import lax
from jax.experimental import pallas as pl
from jax.experimental.pallas import tpu as pltpu

# ---------------- model dims (consistent with the module defaults) -------------
VOCAB = 32          # input_size
E = 64              # embedding_size
H = 128             # hidden_size
O = 10              # output_size
T = 8               # sequence length
B = 8               # batch


# ------------------------------- Pallas kernel ---------------------------------
def lstm_pool_kernel(xg_ref, mask_ref, whh_ref, wo_ref, bo_ref, out_ref):
    bsz = out_ref.shape[0]          # B
    hdim = whh_ref.shape[0]         # H
    seq = xg_ref.shape[0] // bsz    # T

    h = jnp.zeros((bsz, hdim), jnp.float32)
    c = jnp.zeros((bsz, hdim), jnp.float32)
    mx = jnp.full((bsz, hdim), -jnp.inf, jnp.float32)

    whh = whh_ref[...]              # (H, 4H) bf16, loaded once

    # Recurrent loop, fully unrolled (seq small & static).  Only the recurrent
    # 8-row matmul + elementwise gate math remain per step.
    for t in range(seq):
        # xg rows already contain x_t @ W_ih^T + (b_ih + b_hh) (table lookup).
        gates = xg_ref[pl.ds(t * bsz, bsz), :] + jnp.dot(
            h.astype(whh.dtype), whh, preferred_element_type=jnp.float32)

        # Gate columns are [i | f | o | g]: one fused tanh-based sigmoid over
        # (B, 3H) (exact identity sigmoid(x) = 0.5*(1 + tanh(x/2))) and one
        # tanh over (B, H) -- both go to the EUP.
        ifo = 0.5 * jnp.tanh(0.5 * gates[:, :3 * hdim]) + 0.5
        g = jnp.tanh(gates[:, 3 * hdim:])
        i = ifo[:, :hdim]
        f = ifo[:, hdim:2 * hdim]
        o = ifo[:, 2 * hdim:]

        c = f * c + i * g
        h = o * jnp.tanh(c)

        # pack/pad(-inf) + adaptive_max_pool1d == max over valid timesteps:
        # hoisted additive mask is 0 where valid, -inf where padded.
        mx = jnp.maximum(mx, h + mask_ref[pl.ds(t * bsz, bsz), :])

    # Dropout is identity in eval mode; final Linear on the lane-padded head.
    # TODO(synk): training-mode stochastic dropout (pltpu.prng_*) not implemented.
    out_ref[...] = (jnp.dot(mx.astype(wo_ref.dtype), wo_ref[...],
                            preferred_element_type=jnp.float32)
                    + bo_ref[...]).astype(out_ref.dtype)


def char_rnn_classifier_forward(tokens, lengths, params):
    """tokens: (T, B) int32; lengths: (B,) int32 (sorted descending)."""
    seq, bsz = tokens.shape
    hdim = params["w_hh"].shape[1]
    odim = params["w_out"].shape[0]

    # Reorder PyTorch's [i | f | g | o] gate blocks to [i | f | o | g] so the
    # kernel can run a single fused sigmoid over the first 3H columns.
    def reorder(w):
        return jnp.concatenate(
            [w[:2 * hdim], w[3 * hdim:], w[2 * hdim:3 * hdim]], axis=0)

    # Fold Embedding x W_ih^T + fused bias into one (VOCAB, 4H) lookup table;
    # gather per-token gate rows wrapper-side (glue: gather has no tiny-shape
    # in-kernel win here).
    w_ih = reorder(params["w_ih"])                                   # (4H, E)
    bias = reorder(params["b_ih"] + params["b_hh"])                  # (4H,)
    table = params["embedding"] @ w_ih.T + bias[None, :]             # (V, 4H)
    xg = table[tokens.reshape(-1)]                                   # (T*B, 4H)

    # Recurrent weights: bf16 operands, f32 accumulation inside the kernel.
    w_hh = reorder(params["w_hh"]).T.astype(jnp.bfloat16)            # (H, 4H)

    # Hoisted {0, -inf} additive validity mask for the masked max-pool.
    valid = jnp.arange(seq)[:, None] < lengths[None, :]              # (T, B)
    mask = jnp.where(valid.reshape(seq * bsz, 1), 0.0, -jnp.inf)
    mask = jnp.tile(mask.astype(jnp.float32), (1, hdim))             # (T*B, H)

    # Lane-pad the classifier head to a multiple of 128 -> dense final store
    # and a clean MXU tile; padded columns are zero and sliced off below.
    o_pad = ((odim + 127) // 128) * 128
    w_o = (jnp.zeros((hdim, o_pad), jnp.float32)
           .at[:, :odim].set(params["w_out"].T)).astype(jnp.bfloat16)
    b_o = jnp.zeros((1, o_pad), jnp.float32).at[:, :odim].set(params["b_out"])

    out = pl.pallas_call(
        lstm_pool_kernel,
        out_shape=jax.ShapeDtypeStruct((bsz, o_pad), jnp.float32),
        grid_spec=pltpu.PrefetchScalarGridSpec(
            num_scalar_prefetch=0,
            grid=(1,),                                   # single invocation
            in_specs=[
                pl.BlockSpec((seq * bsz, 4 * hdim), lambda i: (0, 0)),  # xg
                pl.BlockSpec((seq * bsz, hdim), lambda i: (0, 0)),      # mask
                pl.BlockSpec((hdim, 4 * hdim), lambda i: (0, 0)),       # W_hh^T
                pl.BlockSpec((hdim, o_pad), lambda i: (0, 0)),          # W_out^T
                pl.BlockSpec((1, o_pad), lambda i: (0, 0)),             # b_out
            ],
            out_specs=pl.BlockSpec((bsz, o_pad), lambda i: (0, 0)),
        ),
        compiler_params=pltpu.CompilerParams(
            dimension_semantics=("arbitrary",)),
    )(xg, mask, w_hh, w_o, b_o)

    # The in-kernel store is already lane-dense; this slice only restores the
    # module's (B, O) output shape for the consumer.
    return out[:, :odim]


# ----------------------------- pure-JAX reference -------------------------------
def reference_forward(tokens, lengths, params):
    emb = params["embedding"][tokens]                        # (T, B, E)
    w_ih, w_hh = params["w_ih"], params["w_hh"]
    b = params["b_ih"] + params["b_hh"]

    def step(carry, x_t):
        h, c = carry
        gates = x_t @ w_ih.T + h @ w_hh.T + b
        i, f, g, o = jnp.split(gates, 4, axis=-1)
        c = jax.nn.sigmoid(f) * c + jax.nn.sigmoid(i) * jnp.tanh(g)
        h = jax.nn.sigmoid(o) * jnp.tanh(c)
        return (h, c), h

    h0 = jnp.zeros((B, H), jnp.float32)
    _, hs = lax.scan(step, (h0, h0), emb)                    # (T, B, H)
    mask = (jnp.arange(T)[:, None] < lengths[None, :])[..., None]
    pooled = jnp.max(jnp.where(mask, hs, -jnp.inf), axis=0)  # (B, H)
    return pooled @ params["w_out"].T + params["b_out"]


# ------------------------------------ main --------------------------------------
def init_params(key):
    ks = jax.random.split(key, 7)
    s = 1.0 / jnp.sqrt(H)
    emb = 0.1 * jax.random.normal(ks[0], (VOCAB, E), jnp.float32)
    emb = emb.at[0].set(0.0)  # padding_idx=0
    return {
        "embedding": emb,
        "w_ih": jax.random.uniform(ks[1], (4 * H, E), jnp.float32, -s, s),
        "w_hh": jax.random.uniform(ks[2], (4 * H, H), jnp.float32, -s, s),
        "b_ih": jax.random.uniform(ks[3], (4 * H,), jnp.float32, -s, s),
        "b_hh": jax.random.uniform(ks[4], (4 * H,), jnp.float32, -s, s),
        "w_out": jax.random.uniform(ks[5], (O, H), jnp.float32, -s, s),
        "b_out": jax.random.uniform(ks[6], (O,), jnp.float32, -s, s),
    }


if __name__ == "__main__":
    key = jax.random.PRNGKey(0)
    params = init_params(key)

    tok_key = jax.random.fold_in(key, 100)
    tokens = jax.random.randint(tok_key, (T, B), 1, VOCAB, dtype=jnp.int32)
    lengths = jnp.array([8, 8, 7, 6, 5, 4, 3, 2], dtype=jnp.int32)  # sorted desc

    # zero out padded token positions (as pack_padded_sequence would ignore them)
    pad_mask = jnp.arange(T)[:, None] < lengths[None, :]
    tokens = jnp.where(pad_mask, tokens, 0)

    out = char_rnn_classifier_forward(tokens, lengths, params)
    out = jax.block_until_ready(out)

    ref = reference_forward(tokens, lengths, params)
    assert out.shape == (B, O)
    # bf16 matmul operands (f32 accumulation) introduce ~1e-3 deviation vs the
    # pure-f32 reference; 2e-2 leaves ample margin while catching real bugs.
    assert jnp.allclose(out, ref, rtol=2e-2, atol=2e-2)

    print("KERNEL_OK")
</pallas_src>

<mosaic_0001>
module attributes {stable_mosaic.version = 11 : i64} {
  func.func @lstm_pool_kernel(%arg0: i32, %arg1: memref<64x512xf32, #tpu.memory_space<vmem>>, %arg2: memref<64x128xf32, #tpu.memory_space<vmem>>, %arg3: memref<128x512xbf16, #tpu.memory_space<vmem>>, %arg4: memref<128x128xbf16, #tpu.memory_space<vmem>>, %arg5: memref<1x128xf32, #tpu.memory_space<vmem>>, %arg6: memref<8x128xf32, #tpu.memory_space<vmem>>) attributes {dimension_semantics = [#tpu.dimension_semantics<arbitrary>], iteration_bounds = array<i64: 1>, scalar_prefetch = 0 : i64, scratch_operands = 0 : i64, tpu.core_type = #tpu.core_type<tc>, window_params = [{pipeline_mode = #tpu.pipeline_mode<synchronous>, transform_indices = @transform_0, window_bounds = array<i64: 64, 512>}, {pipeline_mode = #tpu.pipeline_mode<synchronous>, transform_indices = @transform_1, window_bounds = array<i64: 64, 128>}, {pipeline_mode = #tpu.pipeline_mode<synchronous>, transform_indices = @transform_2, window_bounds = array<i64: 128, 512>}, {pipeline_mode = #tpu.pipeline_mode<synchronous>, transform_indices = @transform_3, window_bounds = array<i64: 128, 128>}, {pipeline_mode = #tpu.pipeline_mode<synchronous>, transform_indices = @transform_4, window_bounds = array<i64: 1, 128>}, {pipeline_mode = #tpu.pipeline_mode<synchronous>, transform_indices = @transform_5, window_bounds = array<i64: 8, 128>}]} {
    %cst = arith.constant 0.000000e+00 : f32
    %0 = vector.broadcast %cst : f32 to vector<8x128xf32>
    %cst_0 = arith.constant 0.000000e+00 : f32
    %1 = vector.broadcast %cst_0 : f32 to vector<8x128xf32>
    %cst_1 = arith.constant 0xFF800000 : f32
    %2 = vector.broadcast %cst_1 : f32 to vector<8x128xf32>
    %c0 = arith.constant 0 : index
    %c0_2 = arith.constant 0 : index
    %3 = vector.load %arg3[%c0, %c0_2] : memref<128x512xbf16, #tpu.memory_space<vmem>>, vector<128x512xbf16>
    %c0_3 = arith.constant 0 : index
    %c0_4 = arith.constant 0 : index
    %4 = vector.load %arg1[%c0_3, %c0_4] : memref<64x512xf32, #tpu.memory_space<vmem>>, vector<8x512xf32>
    %5 = arith.truncf %0 : vector<8x128xf32> to vector<8x128xbf16>
    %cst_5 = arith.constant dense<0.000000e+00> : vector<8x512xf32>
    %6 = tpu.matmul %5, %3, %cst_5 {dimension_numbers = #tpu.dot_dimension_numbers<[1], [0], [0], [1], [0, 0, 1, 1], [], []>} : vector<8x128xbf16>, vector<128x512xbf16>, vector<8x512xf32> -> vector<8x512xf32>
    %7 = arith.addf %4, %6 : vector<8x512xf32>
    %8 = vector.extract_strided_slice %7 {offsets = [0, 0], sizes = [8, 384], strides = [1, 1]} : vector<8x512xf32> to vector<8x384xf32>
    %cst_6 = arith.constant 5.000000e-01 : f32
    %9 = vector.broadcast %cst_6 : f32 to vector<8x384xf32>
    %10 = arith.mulf %9, %8 : vector<8x384xf32>
    %11 = math.tanh %10 : vector<8x384xf32>
    %cst_7 = arith.constant 5.000000e-01 : f32
    %12 = vector.broadcast %cst_7 : f32 to vector<8x384xf32>
    %13 = arith.mulf %12, %11 : vector<8x384xf32>
    %cst_8 = arith.constant 5.000000e-01 : f32
    %14 = vector.broadcast %cst_8 : f32 to vector<8x384xf32>
    %15 = arith.addf %13, %14 : vector<8x384xf32>
    %16 = vector.extract_strided_slice %7 {offsets = [0, 384], sizes = [8, 128], strides = [1, 1]} : vector<8x512xf32> to vector<8x128xf32>
    %17 = math.tanh %16 : vector<8x128xf32>
    %18 = vector.extract_strided_slice %15 {offsets = [0, 0], sizes = [8, 128], strides = [1, 1]} : vector<8x384xf32> to vector<8x128xf32>
    %19 = vector.extract_strided_slice %15 {offsets = [0, 128], sizes = [8, 128], strides = [1, 1]} : vector<8x384xf32> to vector<8x128xf32>
    %20 = vector.extract_strided_slice %15 {offsets = [0, 256], sizes = [8, 128], strides = [1, 1]} : vector<8x384xf32> to vector<8x128xf32>
    %21 = arith.mulf %19, %1 : vector<8x128xf32>
    %22 = arith.mulf %18, %17 : vector<8x128xf32>
    %23 = arith.addf %21, %22 : vector<8x128xf32>
    %24 = math.tanh %23 : vector<8x128xf32>
    %25 = arith.mulf %20, %24 : vector<8x128xf32>
    %c0_9 = arith.constant 0 : index
    %c0_10 = arith.constant 0 : index
    %26 = vector.load %arg2[%c0_9, %c0_10] : memref<64x128xf32, #tpu.memory_space<vmem>>, vector<8x128xf32>
    %27 = arith.addf %25, %26 : vector<8x128xf32>
    %28 = arith.maximumf %2, %27 : vector<8x128xf32>
    %c8 = arith.constant 8 : index
    %c0_11 = arith.constant 0 : index
    %29 = vector.load %arg1[%c8, %c0_11] : memref<64x512xf32, #tpu.memory_space<vmem>>, vector<8x512xf32>
    %30 = arith.truncf %25 : vector<8x128xf32> to vector<8x128xbf16>
    %cst_12 = arith.constant dense<0.000000e+00> : vector<8x512xf32>
    %31 = tpu.matmul %30, %3, %cst_12 {dimension_numbers = #tpu.dot_dimension_numbers<[1], [0], [0], [1], [0, 0, 1, 1], [], []>} : vector<8x128xbf16>, vector<128x512xbf16>, vector<8x512xf32> -> vector<8x512xf32>
    %32 = arith.addf %29, %31 : vector<8x512xf32>
    %33 = vector.extract_strided_slice %32 {offsets = [0, 0], sizes = [8, 384], strides = [1, 1]} : vector<8x512xf32> to vector<8x384xf32>
    %cst_13 = arith.constant 5.000000e-01 : f32
    %34 = vector.broadcast %cst_13 : f32 to vector<8x384xf32>
    %35 = arith.mulf %34, %33 : vector<8x384xf32>
    %36 = math.tanh %35 : vector<8x384xf32>
    %cst_14 = arith.constant 5.000000e-01 : f32
    %37 = vector.broadcast %cst_14 : f32 to vector<8x384xf32>
    %38 = arith.mulf %37, %36 : vector<8x384xf32>
    %cst_15 = arith.constant 5.000000e-01 : f32
    %39 = vector.broadcast %cst_15 : f32 to vector<8x384xf32>
    %40 = arith.addf %38, %39 : vector<8x384xf32>
    %41 = vector.extract_strided_slice %32 {offsets = [0, 384], sizes = [8, 128], strides = [1, 1]} : vector<8x512xf32> to vector<8x128xf32>
    %42 = math.tanh %41 : vector<8x128xf32>
    %43 = vector.extract_strided_slice %40 {offsets = [0, 0], sizes = [8, 128], strides = [1, 1]} : vector<8x384xf32> to vector<8x128xf32>
    %44 = vector.extract_strided_slice %40 {offsets = [0, 128], sizes = [8, 128], strides = [1, 1]} : vector<8x384xf32> to vector<8x128xf32>
    %45 = vector.extract_strided_slice %40 {offsets = [0, 256], sizes = [8, 128], strides = [1, 1]} : vector<8x384xf32> to vector<8x128xf32>
    %46 = arith.mulf %44, %23 : vector<8x128xf32>
    %47 = arith.mulf %43, %42 : vector<8x128xf32>
    %48 = arith.addf %46, %47 : vector<8x128xf32>
    %49 = math.tanh %48 : vector<8x128xf32>
    %50 = arith.mulf %45, %49 : vector<8x128xf32>
    %c8_16 = arith.constant 8 : index
    %c0_17 = arith.constant 0 : index
    %51 = vector.load %arg2[%c8_16, %c0_17] : memref<64x128xf32, #tpu.memory_space<vmem>>, vector<8x128xf32>
    %52 = arith.addf %50, %51 : vector<8x128xf32>
    %53 = arith.maximumf %28, %52 : vector<8x128xf32>
    %c16 = arith.constant 16 : index
    %c0_18 = arith.constant 0 : index
    %54 = vector.load %arg1[%c16, %c0_18] : memref<64x512xf32, #tpu.memory_space<vmem>>, vector<8x512xf32>
    %55 = arith.truncf %50 : vector<8x128xf32> to vector<8x128xbf16>
    %cst_19 = arith.constant dense<0.000000e+00> : vector<8x512xf32>
    %56 = tpu.matmul %55, %3, %cst_19 {dimension_numbers = #tpu.dot_dimension_numbers<[1], [0], [0], [1], [0, 0, 1, 1], [], []>} : vector<8x128xbf16>, vector<128x512xbf16>, vector<8x512xf32> -> vector<8x512xf32>
    %57 = arith.addf %54, %56 : vector<8x512xf32>
    %58 = vector.extract_strided_slice %57 {offsets = [0, 0], sizes = [8, 384], strides = [1, 1]} : vector<8x512xf32> to vector<8x384xf32>
    %cst_20 = arith.constant 5.000000e-01 : f32
    %59 = vector.broadcast %cst_20 : f32 to vector<8x384xf32>
    %60 = arith.mulf %59, %58 : vector<8x384xf32>
    %61 = math.tanh %60 : vector<8x384xf32>
    %cst_21 = arith.constant 5.000000e-01 : f32
    %62 = vector.broadcast %cst_21 : f32 to vector<8x384xf32>
    %63 = arith.mulf %62, %61 : vector<8x384xf32>
    %cst_22 = arith.constant 5.000000e-01 : f32
    %64 = vector.broadcast %cst_22 : f32 to vector<8x384xf32>
    %65 = arith.addf %63, %64 : vector<8x384xf32>
    %66 = vector.extract_strided_slice %57 {offsets = [0, 384], sizes = [8, 128], strides = [1, 1]} : vector<8x512xf32> to vector<8x128xf32>
    %67 = math.tanh %66 : vector<8x128xf32>
    %68 = vector.extract_strided_slice %65 {offsets = [0, 0], sizes = [8, 128], strides = [1, 1]} : vector<8x384xf32> to vector<8x128xf32>
    %69 = vector.extract_strided_slice %65 {offsets = [0, 128], sizes = [8, 128], strides = [1, 1]} : vector<8x384xf32> to vector<8x128xf32>
    %70 = vector.extract_strided_slice %65 {offsets = [0, 256], sizes = [8, 128], strides = [1, 1]} : vector<8x384xf32> to vector<8x128xf32>
    %71 = arith.mulf %69, %48 : vector<8x128xf32>
    %72 = arith.mulf %68, %67 : vector<8x128xf32>
    %73 = arith.addf %71, %72 : vector<8x128xf32>
    %74 = math.tanh %73 : vector<8x128xf32>
    %75 = arith.mulf %70, %74 : vector<8x128xf32>
    %c16_23 = arith.constant 16 : index
    %c0_24 = arith.constant 0 : index
    %76 = vector.load %arg2[%c16_23, %c0_24] : memref<64x128xf32, #tpu.memory_space<vmem>>, vector<8x128xf32>
    %77 = arith.addf %75, %76 : vector<8x128xf32>
    %78 = arith.maximumf %53, %77 : vector<8x128xf32>
    %c24 = arith.constant 24 : index
    %c0_25 = arith.constant 0 : index
    %79 = vector.load %arg1[%c24, %c0_25] : memref<64x512xf32, #tpu.memory_space<vmem>>, vector<8x512xf32>
    %80 = arith.truncf %75 : vector<8x128xf32> to vector<8x128xbf16>
    %cst_26 = arith.constant dense<0.000000e+00> : vector<8x512xf32>
    %81 = tpu.matmul %80, %3, %cst_26 {dimension_numbers = #tpu.dot_dimension_numbers<[1], [0], [0], [1], [0, 0, 1, 1], [], []>} : vector<8x128xbf16>, vector<128x512xbf16>, vector<8x512xf32> -> vector<8x512xf32>
    %82 = arith.addf %79, %81 : vector<8x512xf32>
    %83 = vector.extract_strided_slice %82 {offsets = [0, 0], sizes = [8, 384], strides = [1, 1]} : vector<8x512xf32> to vector<8x384xf32>
    %cst_27 = arith.constant 5.000000e-01 : f32
    %84 = vector.broadcast %cst_27 : f32 to vector<8x384xf32>
    %85 = arith.mulf %84, %83 : vector<8x384xf32>
    %86 = math.tanh %85 : vector<8x384xf32>
    %cst_28 = arith.constant 5.000000e-01 : f32
    %87 = vector.broadcast %cst_28 : f32 to vector<8x384xf32>
    %88 = arith.mulf %87, %86 : vector<8x384xf32>
    %cst_29 = arith.constant 5.000000e-01 : f32
    %89 = vector.broadcast %cst_29 : f32 to vector<8x384xf32>
    %90 = arith.addf %88, %89 : vector<8x384xf32>
    %91 = vector.extract_strided_slice %82 {offsets = [0, 384], sizes = [8, 128], strides = [1, 1]} : vector<8x512xf32> to vector<8x128xf32>
    %92 = math.tanh %91 : vector<8x128xf32>
    %93 = vector.extract_strided_slice %90 {offsets = [0, 0], sizes = [8, 128], strides = [1, 1]} : vector<8x384xf32> to vector<8x128xf32>
    %94 = vector.extract_strided_slice %90 {offsets = [0, 128], sizes = [8, 128], strides = [1, 1]} : vector<8x384xf32> to vector<8x128xf32>
    %95 = vector.extract_strided_slice %90 {offsets = [0, 256], sizes = [8, 128], strides = [1, 1]} : vector<8x384xf32> to vector<8x128xf32>
    %96 = arith.mulf %94, %73 : vector<8x128xf32>
    %97 = arith.mulf %93, %92 : vector<8x128xf32>
    %98 = arith.addf %96, %97 : vector<8x128xf32>
    %99 = math.tanh %98 : vector<8x128xf32>
    %100 = arith.mulf %95, %99 : vector<8x128xf32>
    %c24_30 = arith.constant 24 : index
    %c0_31 = arith.constant 0 : index
    %101 = vector.load %arg2[%c24_30, %c0_31] : memref<64x128xf32, #tpu.memory_space<vmem>>, vector<8x128xf32>
    %102 = arith.addf %100, %101 : vector<8x128xf32>
    %103 = arith.maximumf %78, %102 : vector<8x128xf32>
    %c32 = arith.constant 32 : index
    %c0_32 = arith.constant 0 : index
    %104 = vector.load %arg1[%c32, %c0_32] : memref<64x512xf32, #tpu.memory_space<vmem>>, vector<8x512xf32>
    %105 = arith.truncf %100 : vector<8x128xf32> to vector<8x128xbf16>
    %cst_33 = arith.constant dense<0.000000e+00> : vector<8x512xf32>
    %106 = tpu.matmul %105, %3, %cst_33 {dimension_numbers = #tpu.dot_dimension_numbers<[1], [0], [0], [1], [0, 0, 1, 1], [], []>} : vector<8x128xbf16>, vector<128x512xbf16>, vector<8x512xf32> -> vector<8x512xf32>
    %107 = arith.addf %104, %106 : vector<8x512xf32>
    %108 = vector.extract_strided_slice %107 {offsets = [0, 0], sizes = [8, 384], strides = [1, 1]} : vector<8x512xf32> to vector<8x384xf32>
    %cst_34 = arith.constant 5.000000e-01 : f32
    %109 = vector.broadcast %cst_34 : f32 to vector<8x384xf32>
    %110 = arith.mulf %109, %108 : vector<8x384xf32>
    %111 = math.tanh %110 : vector<8x384xf32>
    %cst_35 = arith.constant 5.000000e-01 : f32
    %112 = vector.broadcast %cst_35 : f32 to vector<8x384xf32>
    %113 = arith.mulf %112, %111 : vector<8x384xf32>
    %cst_36 = arith.constant 5.000000e-01 : f32
    %114 = vector.broadcast %cst_36 : f32 to vector<8x384xf32>
    %115 = arith.addf %113, %114 : vector<8x384xf32>
    %116 = vector.extract_strided_slice %107 {offsets = [0, 384], sizes = [8, 128], strides = [1, 1]} : vector<8x512xf32> to vector<8x128xf32>
    %117 = math.tanh %116 : vector<8x128xf32>
    %118 = vector.extract_strided_slice %115 {offsets = [0, 0], sizes = [8, 128], strides = [1, 1]} : vector<8x384xf32> to vector<8x128xf32>
    %119 = vector.extract_strided_slice %115 {offsets = [0, 128], sizes = [8, 128], strides = [1, 1]} : vector<8x384xf32> to vector<8x128xf32>
    %120 = vector.extract_strided_slice %115 {offsets = [0, 256], sizes = [8, 128], strides = [1, 1]} : vector<8x384xf32> to vector<8x128xf32>
    %121 = arith.mulf %119, %98 : vector<8x128xf32>
    %122 = arith.mulf %118, %117 : vector<8x128xf32>
    %123 = arith.addf %121, %122 : vector<8x128xf32>
    %124 = math.tanh %123 : vector<8x128xf32>
    %125 = arith.mulf %120, %124 : vector<8x128xf32>
    %c32_37 = arith.constant 32 : index
    %c0_38 = arith.constant 0 : index
    %126 = vector.load %arg2[%c32_37, %c0_38] : memref<64x128xf32, #tpu.memory_space<vmem>>, vector<8x128xf32>
    %127 = arith.addf %125, %126 : vector<8x128xf32>
    %128 = arith.maximumf %103, %127 : vector<8x128xf32>
    %c40 = arith.constant 40 : index
    %c0_39 = arith.constant 0 : index
    %129 = vector.load %arg1[%c40, %c0_39] : memref<64x512xf32, #tpu.memory_space<vmem>>, vector<8x512xf32>
    %130 = arith.truncf %125 : vector<8x128xf32> to vector<8x128xbf16>
    %cst_40 = arith.constant dense<0.000000e+00> : vector<8x512xf32>
    %131 = tpu.matmul %130, %3, %cst_40 {dimension_numbers = #tpu.dot_dimension_numbers<[1], [0], [0], [1], [0, 0, 1, 1], [], []>} : vector<8x128xbf16>, vector<128x512xbf16>, vector<8x512xf32> -> vector<8x512xf32>
    %132 = arith.addf %129, %131 : vector<8x512xf32>
    %133 = vector.extract_strided_slice %132 {offsets = [0, 0], sizes = [8, 384], strides = [1, 1]} : vector<8x512xf32> to vector<8x384xf32>
    %cst_41 = arith.constant 5.000000e-01 : f32
    %134 = vector.broadcast %cst_41 : f32 to vector<8x384xf32>
    %135 = arith.mulf %134, %133 : vector<8x384xf32>
    %136 = math.tanh %135 : vector<8x384xf32>
    %cst_42 = arith.constant 5.000000e-01 : f32
    %137 = vector.broadcast %cst_42 : f32 to vector<8x384xf32>
    %138 = arith.mulf %137, %136 : vector<8x384xf32>
    %cst_43 = arith.constant 5.000000e-01 : f32
    %139 = vector.broadcast %cst_43 : f32 to vector<8x384xf32>
    %140 = arith.addf %138, %139 : vector<8x384xf32>
    %141 = vector.extract_strided_slice %132 {offsets = [0, 384], sizes = [8, 128], strides = [1, 1]} : vector<8x512xf32> to vector<8x128xf32>
    %142 = math.tanh %141 : vector<8x128xf32>
    %143 = vector.extract_strided_slice %140 {offsets = [0, 0], sizes = [8, 128], strides = [1, 1]} : vector<8x384xf32> to vector<8x128xf32>
    %144 = vector.extract_strided_slice %140 {offsets = [0, 128], sizes = [8, 128], strides = [1, 1]} : vector<8x384xf32> to vector<8x128xf32>
    %145 = vector.extract_strided_slice %140 {offsets = [0, 256], sizes = [8, 128], strides = [1, 1]} : vector<8x384xf32> to vector<8x128xf32>
    %146 = arith.mulf %144, %123 : vector<8x128xf32>
    %147 = arith.mulf %143, %142 : vector<8x128xf32>
    %148 = arith.addf %146, %147 : vector<8x128xf32>
    %149 = math.tanh %148 : vector<8x128xf32>
    %150 = arith.mulf %145, %149 : vector<8x128xf32>
    %c40_44 = arith.constant 40 : index
    %c0_45 = arith.constant 0 : index
    %151 = vector.load %arg2[%c40_44, %c0_45] : memref<64x128xf32, #tpu.memory_space<vmem>>, vector<8x128xf32>
    %152 = arith.addf %150, %151 : vector<8x128xf32>
    %153 = arith.maximumf %128, %152 : vector<8x128xf32>
    %c48 = arith.constant 48 : index
    %c0_46 = arith.constant 0 : index
    %154 = vector.load %arg1[%c48, %c0_46] : memref<64x512xf32, #tpu.memory_space<vmem>>, vector<8x512xf32>
    %155 = arith.truncf %150 : vector<8x128xf32> to vector<8x128xbf16>
    %cst_47 = arith.constant dense<0.000000e+00> : vector<8x512xf32>
    %156 = tpu.matmul %155, %3, %cst_47 {dimension_numbers = #tpu.dot_dimension_numbers<[1], [0], [0], [1], [0, 0, 1, 1], [], []>} : vector<8x128xbf16>, vector<128x512xbf16>, vector<8x512xf32> -> vector<8x512xf32>
    %157 = arith.addf %154, %156 : vector<8x512xf32>
    %158 = vector.extract_strided_slice %157 {offsets = [0, 0], sizes = [8, 384], strides = [1, 1]} : vector<8x512xf32> to vector<8x384xf32>
    %cst_48 = arith.constant 5.000000e-01 : f32
    %159 = vector.broadcast %cst_48 : f32 to vector<8x384xf32>
    %160 = arith.mulf %159, %158 : vector<8x384xf32>
    %161 = math.tanh %160 : vector<8x384xf32>
    %cst_49 = arith.constant 5.000000e-01 : f32
    %162 = vector.broadcast %cst_49 : f32 to vector<8x384xf32>
    %163 = arith.mulf %162, %161 : vector<8x384xf32>
    %cst_50 = arith.constant 5.000000e-01 : f32
    %164 = vector.broadcast %cst_50 : f32 to vector<8x384xf32>
    %165 = arith.addf %163, %164 : vector<8x384xf32>
    %166 = vector.extract_strided_slice %157 {offsets = [0, 384], sizes = [8, 128], strides = [1, 1]} : vector<8x512xf32> to vector<8x128xf32>
    %167 = math.tanh %166 : vector<8x128xf32>
    %168 = vector.extract_strided_slice %165 {offsets = [0, 0], sizes = [8, 128], strides = [1, 1]} : vector<8x384xf32> to vector<8x128xf32>
    %169 = vector.extract_strided_slice %165 {offsets = [0, 128], sizes = [8, 128], strides = [1, 1]} : vector<8x384xf32> to vector<8x128xf32>
    %170 = vector.extract_strided_slice %165 {offsets = [0, 256], sizes = [8, 128], strides = [1, 1]} : vector<8x384xf32> to vector<8x128xf32>
    %171 = arith.mulf %169, %148 : vector<8x128xf32>
    %172 = arith.mulf %168, %167 : vector<8x128xf32>
    %173 = arith.addf %171, %172 : vector<8x128xf32>
    %174 = math.tanh %173 : vector<8x128xf32>
    %175 = arith.mulf %170, %174 : vector<8x128xf32>
    %c48_51 = arith.constant 48 : index
    %c0_52 = arith.constant 0 : index
    %176 = vector.load %arg2[%c48_51, %c0_52] : memref<64x128xf32, #tpu.memory_space<vmem>>, vector<8x128xf32>
    %177 = arith.addf %175, %176 : vector<8x128xf32>
    %178 = arith.maximumf %153, %177 : vector<8x128xf32>
    %c56 = arith.constant 56 : index
    %c0_53 = arith.constant 0 : index
    %179 = vector.load %arg1[%c56, %c0_53] : memref<64x512xf32, #tpu.memory_space<vmem>>, vector<8x512xf32>
    %180 = arith.truncf %175 : vector<8x128xf32> to vector<8x128xbf16>
    %cst_54 = arith.constant dense<0.000000e+00> : vector<8x512xf32>
    %181 = tpu.matmul %180, %3, %cst_54 {dimension_numbers = #tpu.dot_dimension_numbers<[1], [0], [0], [1], [0, 0, 1, 1], [], []>} : vector<8x128xbf16>, vector<128x512xbf16>, vector<8x512xf32> -> vector<8x512xf32>
    %182 = arith.addf %179, %181 : vector<8x512xf32>
    %183 = vector.extract_strided_slice %182 {offsets = [0, 0], sizes = [8, 384], strides = [1, 1]} : vector<8x512xf32> to vector<8x384xf32>
    %cst_55 = arith.constant 5.000000e-01 : f32
    %184 = vector.broadcast %cst_55 : f32 to vector<8x384xf32>
    %185 = arith.mulf %184, %183 : vector<8x384xf32>
    %186 = math.tanh %185 : vector<8x384xf32>
    %cst_56 = arith.constant 5.000000e-01 : f32
    %187 = vector.broadcast %cst_56 : f32 to vector<8x384xf32>
    %188 = arith.mulf %187, %186 : vector<8x384xf32>
    %cst_57 = arith.constant 5.000000e-01 : f32
    %189 = vector.broadcast %cst_57 : f32 to vector<8x384xf32>
    %190 = arith.addf %188, %189 : vector<8x384xf32>
    %191 = vector.extract_strided_slice %182 {offsets = [0, 384], sizes = [8, 128], strides = [1, 1]} : vector<8x512xf32> to vector<8x128xf32>
    %192 = math.tanh %191 : vector<8x128xf32>
    %193 = vector.extract_strided_slice %190 {offsets = [0, 0], sizes = [8, 128], strides = [1, 1]} : vector<8x384xf32> to vector<8x128xf32>
    %194 = vector.extract_strided_slice %190 {offsets = [0, 128], sizes = [8, 128], strides = [1, 1]} : vector<8x384xf32> to vector<8x128xf32>
    %195 = vector.extract_strided_slice %190 {offsets = [0, 256], sizes = [8, 128], strides = [1, 1]} : vector<8x384xf32> to vector<8x128xf32>
    %196 = arith.mulf %194, %173 : vector<8x128xf32>
    %197 = arith.mulf %193, %192 : vector<8x128xf32>
    %198 = arith.addf %196, %197 : vector<8x128xf32>
    %199 = math.tanh %198 : vector<8x128xf32>
    %200 = arith.mulf %195, %199 : vector<8x128xf32>
    %c56_58 = arith.constant 56 : index
    %c0_59 = arith.constant 0 : index
    %201 = vector.load %arg2[%c56_58, %c0_59] : memref<64x128xf32, #tpu.memory_space<vmem>>, vector<8x128xf32>
    %202 = arith.addf %200, %201 : vector<8x128xf32>
    %203 = arith.maximumf %178, %202 : vector<8x128xf32>
    %204 = arith.truncf %203 : vector<8x128xf32> to vector<8x128xbf16>
    %c0_60 = arith.constant 0 : index
    %c0_61 = arith.constant 0 : index
    %205 = vector.load %arg4[%c0_60, %c0_61] : memref<128x128xbf16, #tpu.memory_space<vmem>>, vector<128x128xbf16>
    %cst_62 = arith.constant dense<0.000000e+00> : vector<8x128xf32>
    %206 = tpu.matmul %204, %205, %cst_62 {dimension_numbers = #tpu.dot_dimension_numbers<[1], [0], [0], [1], [0, 0, 1, 1], [], []>} : vector<8x128xbf16>, vector<128x128xbf16>, vector<8x128xf32> -> vector<8x128xf32>
    %c0_63 = arith.constant 0 : index
    %c0_64 = arith.constant 0 : index
    %207 = vector.load %arg5[%c0_63, %c0_64] : memref<1x128xf32, #tpu.memory_space<vmem>>, vector<1x128xf32>
    %208 = vector.broadcast %207 : vector<1x128xf32> to vector<8x128xf32>
    %209 = arith.addf %206, %208 : vector<8x128xf32>
    %c0_65 = arith.constant 0 : index
    %c0_66 = arith.constant 0 : index
    %210 = vector.load %arg6[%c0_65, %c0_66] : memref<8x128xf32, #tpu.memory_space<vmem>>, vector<8x128xf32>
    tpu.vector_store %arg6[%c0_65, %c0_66], %209 {strides = array<i32>} : memref<8x128xf32, #tpu.memory_space<vmem>>, vector<8x128xf32>,
    return
  }
  func.func @transform_0(%arg0: i32) -> (i32, i32) {
    %c0_i32 = arith.constant 0 : i32
    %c0_i32_0 = arith.constant 0 : i32
    %c0_i32_1 = arith.constant 0 : i32
    return %c0_i32, %c0_i32_0 : i32, i32
  }
  func.func @transform_1(%arg0: i32) -> (i32, i32) {
    %c0_i32 = arith.constant 0 : i32
    %c0_i32_0 = arith.constant 0 : i32
    %c0_i32_1 = arith.constant 0 : i32
    return %c0_i32, %c0_i32_0 : i32, i32
  }
  func.func @transform_2(%arg0: i32) -> (i32, i32) {
    %c0_i32 = arith.constant 0 : i32
    %c0_i32_0 = arith.constant 0 : i32
    %c0_i32_1 = arith.constant 0 : i32
    return %c0_i32, %c0_i32_0 : i32, i32
  }
  func.func @transform_3(%arg0: i32) -> (i32, i32) {
    %c0_i32 = arith.constant 0 : i32
    %c0_i32_0 = arith.constant 0 : i32
    %c0_i32_1 = arith.constant 0 : i32
    return %c0_i32, %c0_i32_0 : i32, i32
  }
  func.func @transform_4(%arg0: i32) -> (i32, i32) {
    %c0_i32 = arith.constant 0 : i32
    %c0_i32_0 = arith.constant 0 : i32
    %c0_i32_1 = arith.constant 0 : i32
    return %c0_i32, %c0_i32_0 : i32, i32
  }
  func.func @transform_5(%arg0: i32) -> (i32, i32) {
    %c0_i32 = arith.constant 0 : i32
    %c0_i32_0 = arith.constant 0 : i32
    %c0_i32_1 = arith.constant 0 : i32
    return %c0_i32, %c0_i32_0 : i32, i32
  }
}

</mosaic_0001>

<bundles_post_ra>
// kernel: tpu_custom_call.1
= control target key start
LH: loop header
LB: loop body
LE: loop exit
PB: predicated region body
PF: predicated region fallthrough
CT: control target
= control target key end

     0   :  { %10 = vsyncpa [#allocation3], 0  ;;  %s2143_s0 = inlined_call_operand.hbm [shape: f32[64,512], index: 0, kind: input, shape index: {}]   ;;  %s2144_s1 = inlined_call_operand.hbm [shape: f32[64,128], index: 1, kind: input, shape index: {}]   ;;  %s2145_s2 = inlined_call_operand.hbm [shape: bf16[128,512], index: 2, kind: input, shape index: {}]   ;;  %s2146_s3 = inlined_call_operand.hbm [shape: bf16[128,128], index: 3, kind: input, shape index: {}]   ;;  %s2147_s4 = inlined_call_operand.vmem [shape: f32[1,128], index: 4, kind: input, shape index: {}]   ;;  %s2148_s5 = inlined_call_operand.hbm [shape: f32[8,128], index: 5, kind: output, shape index: {}]  }
   0x1   :  { %11 = vsyncpa [#allocation6], 0 }
   0x2   :  { %12 = vsyncpa [#allocation9], 0 }
   0x3   :  { %13 = vsyncpa [#allocation4], 0  ;;  %s1665_s18 = smov [#allocation5]   ;;  %s1547_s22 = scalar_lea.hbm %s2144_s1, 1024 }
   0x4   :  { %s31_s19 = sshll.u32 %s1665_s18, 4  ;;  %p1548_p0 = scmp.ne.s32.totalorder %s2144_s1, %s1547_s22  ;;  %s32_s19 = int_to_ptr.vmem [resolvable:$true] %s31_s19 }
   0x5   :  { %p1551_p1 = scmp.lt.u32.totalorder %s1547_s22, %s2144_s1 }
   0x7   :  { %p1553_p2 = pnand %p1551_p1, %p1548_p0 }
   0x9   :  { %1556 = shalt.err (!%p1553_p2)
}
   0xa   :  { %s1557_s27 = scalar_lea.vmem %s32_s19, 1024  ;;  %p1562_p4 = scmp.lt.s32.totalorder %s32_s19, %s32_s19 }
   0xb   :  { %p1558_p3 = scmp.ne.s32.totalorder %s32_s19, %s1557_s27  ;;  %p1563_p5 = scmp.lt.s32.totalorder %s1557_s27, %s1557_s27 }
   0xd   :  { %p1564_p6 = por %p1563_p5, %p1562_p4 }
   0xf   :  { %p1565_p7 = pnand %p1564_p6, %p1558_p3 }
  0x11   :  { %1568 = shalt.err (!%p1565_p7)
}
  0x12   :  { %s1666_s28 = smov 128   ;;  %s1667_s29 = smov 8  }
  0x13   :  { %37 = dma.hbm_to_vmem [thread:$0]  %s2144_s1, 1024, %s32_s19, [#allocation6], %s1666_s28, %s1666_s28, %s1667_s29  }
  0x14   :  { %s1668_s7 = smov [#allocation2]   ;;  %s1569_s11 = scalar_lea.hbm %s2143_s0, 4096 }
  0x15   :  { %s19_s8 = sshll.u32 %s1668_s7, 4  ;;  %p1570_p8 = scmp.ne.s32.totalorder %s2143_s0, %s1569_s11  ;;  %s20_s8 = int_to_ptr.vmem [resolvable:$true] %s19_s8 }
  0x16   :  { %p1573_p9 = scmp.lt.u32.totalorder %s1569_s11, %s2143_s0 }
  0x18   :  { %p1575_p10 = pnand %p1573_p9, %p1570_p8 }
  0x1a   :  { %1578 = shalt.err (!%p1575_p10)
}
  0x1b   :  { %s1579_s16 = scalar_lea.vmem %s20_s8, 4096  ;;  %p1584_p12 = scmp.lt.s32.totalorder %s20_s8, %s20_s8 }
  0x1c   :  { %p1580_p11 = scmp.ne.s32.totalorder %s20_s8, %s1579_s16  ;;  %p1585_p13 = scmp.lt.s32.totalorder %s1579_s16, %s1579_s16 }
  0x1e   :  { %p1586_p0 = por %p1585_p13, %p1584_p12 }
  0x20   :  { %p1587_p1 = pnand %p1586_p0, %p1580_p11 }
  0x22   :  { %1590 = shalt.err (!%p1587_p1)
}
  0x23   :  { %s1669_s1 = smov 512   ;;  %s1670_s17 = smov 32  }
  0x24   :  { %25 = dma.hbm_to_vmem [thread:$0]  %s2143_s0, 4096, %s20_s8, [#allocation3], %s1669_s1, %s1669_s1, %s1670_s17  }
  0x25   :  { %s1671_s20 = smov [#allocation7]   ;;  %s1591_s24 = scalar_lea.hbm %s2145_s2, 4096 }
  0x26   :  { %s43_s21 = sshll.u32 %s1671_s20, 4  ;;  %p1592_p2 = scmp.ne.s32.totalorder %s2145_s2, %s1591_s24  ;;  %s44_s21 = int_to_ptr.vmem [resolvable:$true] %s43_s21 }
  0x27   :  { %p1595_p3 = scmp.lt.u32.totalorder %s1591_s24, %s2145_s2 }
  0x29   :  { %p1597_p4 = pnand %p1595_p3, %p1592_p2 }
  0x2b   :  { %1600 = shalt.err (!%p1597_p4)
}
  0x2c   :  { %s1601_s29 = scalar_lea.vmem %s44_s21, 4096  ;;  %p1606_p6 = scmp.lt.s32.totalorder %s44_s21, %s44_s21 }
  0x2d   :  { %p1602_p5 = scmp.ne.s32.totalorder %s44_s21, %s1601_s29  ;;  %p1607_p7 = scmp.lt.s32.totalorder %s1601_s29, %s1601_s29 }
  0x2f   :  { %p1608_p8 = por %p1607_p7, %p1606_p6 }
  0x31   :  { %p1609_p9 = pnand %p1608_p8, %p1602_p5 }
  0x33   :  { %1612 = shalt.err (!%p1609_p9)
}
  0x34   :  { %s1672_s0 = smov 256   ;;  %s1673_s30 = smov 16  }
  0x35   :  { %49 = dma.hbm_to_vmem [thread:$0]  %s2145_s2, 4096, %s44_s21, [#allocation6], %s1672_s0, %s1672_s0, %s1673_s30  }
  0x36   :  { %s1674_s8 = smov [#allocation8]   ;;  %s1613_s12 = scalar_lea.hbm %s2146_s3, 1024 }
  0x37   :  { %s55_s9 = sshll.u32 %s1674_s8, 4  ;;  %p1614_p10 = scmp.ne.s32.totalorder %s2146_s3, %s1613_s12  ;;  %s56_s9 = int_to_ptr.vmem [resolvable:$true] %s55_s9 }
  0x38   :  { %p1617_p11 = scmp.lt.u32.totalorder %s1613_s12, %s2146_s3 }
  0x3a   :  { %p1619_p12 = pnand %p1617_p11, %p1614_p10 }
  0x3c   :  { %1622 = shalt.err (!%p1619_p12)
}
  0x3d   :  { %s1623_s1 = scalar_lea.vmem %s56_s9, 1024  ;;  %p1628_p0 = scmp.lt.s32.totalorder %s56_s9, %s56_s9 }
  0x3e   :  { %p1624_p13 = scmp.ne.s32.totalorder %s56_s9, %s1623_s1  ;;  %p1629_p1 = scmp.lt.s32.totalorder %s1623_s1, %s1623_s1 }
  0x40   :  { %p1630_p2 = por %p1629_p1, %p1628_p0 }
  0x42   :  { %p1631_p3 = pnand %p1630_p2, %p1624_p13 }
  0x44   :  { %1634 = shalt.err (!%p1631_p3)
}
  0x45   :  { %s1675_s2 = smov 64   ;;  %s1676_s17 = smov 4  }
  0x46   :  { %61 = dma.hbm_to_vmem [thread:$0]  %s2146_s3, 1024, %s56_s9, [#allocation9], %s1675_s2, %s1675_s2, %s1676_s17  }
  0x47   :  { %1657 = dma.done.wait [#allocation3], 4096  }
  0x48   :  { %1658 = vsyncadd [#allocation3], 4294963200 }
  0x49   :  { %1659 = dma.done.wait [#allocation6], 5120  }
  0x4a   :  { %1660 = vsyncadd [#allocation6], 4294962176 }
  0x4b   :  { %1661 = dma.done.wait [#allocation9], 1024  }
  0x4c   :  { %1662 = vsyncadd [#allocation9], 4294966272  ;;  %v1677_v0 = vmov 0   ;;  %v1761_v1 = vld [vmem:[#allocation7 + $0x4] ss:$16 sps:$4 sm:$0xff]   ;;  %v110_v34 = vld [vmem:[#allocation2 + $0x8] sm:$0xff] }
  0x4d   :  { %305 = vmatprep.mubr.bf16.mxu0 %v1677_v0  ;;  %346 = vmatprep.mubr.bf16.mxu1 %v1677_v0  ;;  %v1763_v2 = vld [vmem:[#allocation7] ss:$16 sps:$4 sm:$0xff]   ;;  %v1766_v3 = vld [vmem:[#allocation7 + $0xc] ss:$16 sps:$4 sm:$0xff]   ;;  %v1769_v4 = vld [vmem:[#allocation7 + $0x24] ss:$16 sps:$4 sm:$0xff]  }
  0x4e   :  { %273 = vmatprep.subr.bf16.mxu0 %v1761_v1  ;;  %v1771_v5 = vld [vmem:[#allocation7 + $0x8] ss:$16 sps:$4 sm:$0xff]   ;;  %v1773_v6 = vld [vmem:[#allocation7 + $0x20] ss:$16 sps:$4 sm:$0xff]   ;;  %314 = vmatprep.subr.bf16.mxu1 %v1766_v3  ;;  %v1776_v7 = vld [vmem:[#allocation7 + $0x2c] ss:$16 sps:$4 sm:$0xff]  }
  0x4f   :  { %274 = vmatpush1.bf16.msra.mxu0 %v1763_v2  ;;  %315 = vmatpush1.bf16.msra.mxu1 %v1771_v5  ;;  %v1780_v8 = vld [vmem:[#allocation7 + $0x44] ss:$16 sps:$4 sm:$0xff]   ;;  %v1783_v9 = vld [vmem:[#allocation7 + $0x28] ss:$16 sps:$4 sm:$0xff]   ;;  %v1785_v10 = vld [vmem:[#allocation7 + $0x40] ss:$16 sps:$4 sm:$0xff]  }
  0x50   :  { %275 = vmatprep.subr.bf16.mxu0 %v1769_v4  ;;  %316 = vmatprep.subr.bf16.mxu1 %v1776_v7  ;;  %v1788_v11 = vld [vmem:[#allocation7 + $0x4c] ss:$16 sps:$4 sm:$0xff]   ;;  %v1791_v12 = vld [vmem:[#allocation7 + $0x64] ss:$16 sps:$4 sm:$0xff]   ;;  %v1794_v13 = vld [vmem:[#allocation7 + $0x48] ss:$16 sps:$4 sm:$0xff]  }
  0x51   :  { %v1797_v14 = vld [vmem:[#allocation7 + $0x6c] ss:$16 sps:$4 sm:$0xff]   ;;  %v1800_v15 = vld [vmem:[#allocation7 + $0x60] ss:$16 sps:$4 sm:$0xff]   ;;  %v1803_v16 = vld [vmem:[#allocation7 + $0x84] ss:$16 sps:$4 sm:$0xff]  }
  0x52   :  { %v1806_v17 = vld [vmem:[#allocation7 + $0x68] ss:$16 sps:$4 sm:$0xff]   ;;  %v1809_v18 = vld [vmem:[#allocation7 + $0x8c] ss:$16 sps:$4 sm:$0xff]   ;;  %v1812_v19 = vld [vmem:[#allocation7 + $0x80] ss:$16 sps:$4 sm:$0xff]  }
  0x53   :  { %276 = vmatpush1.bf16.msra.mxu0 %v1773_v6  ;;  %317 = vmatpush1.bf16.msra.mxu1 %v1783_v9  ;;  %v1815_v20 = vld [vmem:[#allocation7 + $0xa4] ss:$16 sps:$4 sm:$0xff]   ;;  %v1818_v21 = vld [vmem:[#allocation7 + $0x88] ss:$16 sps:$4 sm:$0xff]   ;;  %v1821_v22 = vld [vmem:[#allocation7 + $0xac] ss:$16 sps:$4 sm:$0xff]  }
  0x54   :  { %277 = vmatprep.subr.bf16.mxu0 %v1780_v8  ;;  %318 = vmatprep.subr.bf16.mxu1 %v1788_v11  ;;  %v1824_v23 = vld [vmem:[#allocation7 + $0xa0] ss:$16 sps:$4 sm:$0xff]   ;;  %v1826_v24 = vld [vmem:[#allocation7 + $0xc4] ss:$16 sps:$4 sm:$0xff]   ;;  %v1829_v25 = vld [vmem:[#allocation7 + $0xa8] ss:$16 sps:$4 sm:$0xff]  }
  0x55   :  { %v1832_v26 = vld [vmem:[#allocation7 + $0xc0] ss:$16 sps:$4 sm:$0xff]   ;;  %v1834_v27 = vld [vmem:[#allocation7 + $0xcc] ss:$16 sps:$4 sm:$0xff]   ;;  %v1837_v28 = vld [vmem:[#allocation7 + $0xe4] ss:$16 sps:$4 sm:$0xff]  }
  0x56   :  { %v1840_v29 = vld [vmem:[#allocation7 + $0xc8] ss:$16 sps:$4 sm:$0xff]   ;;  %v1843_v30 = vld [vmem:[#allocation7 + $0xec] ss:$16 sps:$4 sm:$0xff]   ;;  %v1848_v31 = vld [vmem:[#allocation7 + $0xe0] ss:$16 sps:$4 sm:$0xff]  }
  0x57   :  { %278 = vmatpush1.bf16.msra.mxu0 %v1785_v10  ;;  %319 = vmatpush1.bf16.msra.mxu1 %v1794_v13  ;;  %v1852_v32 = vld [vmem:[#allocation7 + $0xe8] ss:$16 sps:$4 sm:$0xff]   ;;  %v109_v33 = vld [vmem:[#allocation2] sm:$0xff]  ;;  %v111_v49 = vld [vmem:[#allocation2 + $0x10] sm:$0xff]  ;;  %vm1679_vm0 = vmmov 0   ;;  %s1680_s21 = smov [#allocation10]  }
  0x58   :  { %279 = vmatprep.subr.bf16.mxu0 %v1791_v12  ;;  %320 = vmatprep.subr.bf16.mxu1 %v1797_v14  ;;  %v112_v38 = vld [vmem:[#allocation2 + $0x18] sm:$0xff]  ;;  %s1282_s22 = sshll.u32 %s1680_s21, 4  ;;  %s1283_s22 = int_to_ptr.vmem [resolvable:$true] %s1282_s22 }
  0x59   :  { %s1635_s23 = scalar_lea.vmem %s1283_s22, 128  ;;  %p1640_p5 = scmp.lt.s32.totalorder %s1283_s22, %s1283_s22 }
  0x5a   :  { %p1636_p4 = scmp.ne.s32.totalorder %s1283_s22, %s1635_s23  ;;  %p1641_p6 = scmp.lt.s32.totalorder %s1635_s23, %s1635_s23 }
  0x5b   :  { %280 = vmatpush1.bf16.msra.mxu0 %v1800_v15  ;;  %321 = vmatpush1.bf16.msra.mxu1 %v1806_v17 }
  0x5c   :  { %281 = vmatprep.subr.bf16.mxu0 %v1803_v16  ;;  %322 = vmatprep.subr.bf16.mxu1 %v1809_v18  ;;  %p1642_p7 = por %p1641_p6, %p1640_p5 }
  0x5e   :  { %p1643_p8 = pnand %p1642_p7, %p1636_p4 }
  0x5f   :  { %282 = vmatpush1.bf16.msra.mxu0 %v1812_v19  ;;  %323 = vmatpush1.bf16.msra.mxu1 %v1818_v21 }
  0x60   :  { %283 = vmatprep.subr.bf16.mxu0 %v1815_v20  ;;  %324 = vmatprep.subr.bf16.mxu1 %v1821_v22 }
  0x63   :  { %284 = vmatpush1.bf16.msra.mxu0 %v1824_v23  ;;  %325 = vmatpush1.bf16.msra.mxu1 %v1829_v25 }
  0x64   :  { %285 = vmatprep.subr.bf16.mxu0 %v1826_v24  ;;  %326 = vmatprep.subr.bf16.mxu1 %v1834_v27 }
  0x67   :  { %286 = vmatpush1.bf16.msra.mxu0 %v1832_v26  ;;  %327 = vmatpush1.bf16.msra.mxu1 %v1840_v29 }
  0x68   :  { %287 = vmatprep.subr.bf16.mxu0 %v1837_v28  ;;  %328 = vmatprep.subr.bf16.mxu1 %v1843_v30 }
  0x6b   :  { %288 = vmatpush1.bf16.msra.mxu0 %v1848_v31  ;;  %329 = vmatpush1.bf16.msra.mxu1 %v1852_v32 }
  0x6c   :  { %384 = vmatprep.subr.bf16.mxu0 %v1761_v1  ;;  %425 = vmatprep.subr.bf16.mxu1 %v1766_v3 }
  0x6e   :  { %306 = vmatmul.mubr.bf16.vlgmr.msra.gmra.mrb[0].mxu0 %v1677_v0  ;;  %347 = vmatmul.mubr.bf16.vlgmr.msra.gmra.mrb[0].mxu1 %v1677_v0 }
  0x6f   :  { %385 = vmatpush1.bf16.msra.mxu0 %v1763_v2  ;;  %416 = vmatprep.mubr.bf16.mxu0 %v1677_v0 }
  0x70   :  { %386 = vmatprep.subr.bf16.mxu0 %v1769_v4  ;;  %426 = vmatpush1.bf16.msra.mxu1 %v1771_v5 }
  0x71   :  { %457 = vmatprep.mubr.bf16.mxu1 %v1677_v0  ;;  %427 = vmatprep.subr.bf16.mxu1 %v1776_v7 }
  0x73   :  { %387 = vmatpush1.bf16.msra.mxu0 %v1773_v6 }
  0x74   :  { %388 = vmatprep.subr.bf16.mxu0 %v1780_v8  ;;  %428 = vmatpush1.bf16.msra.mxu1 %v1783_v9 }
  0x75   :  { %429 = vmatprep.subr.bf16.mxu1 %v1788_v11 }
  0x77   :  { %389 = vmatpush1.bf16.msra.mxu0 %v1785_v10 }
  0x78   :  { %390 = vmatprep.subr.bf16.mxu0 %v1791_v12  ;;  %430 = vmatpush1.bf16.msra.mxu1 %v1794_v13 }
  0x79   :  { %431 = vmatprep.subr.bf16.mxu1 %v1797_v14 }
  0x7b   :  { %391 = vmatpush1.bf16.msra.mxu0 %v1800_v15 }
  0x7c   :  { %392 = vmatprep.subr.bf16.mxu0 %v1803_v16  ;;  %432 = vmatpush1.bf16.msra.mxu1 %v1806_v17 }
  0x7d   :  { %433 = vmatprep.subr.bf16.mxu1 %v1809_v18 }
  0x7f   :  { %393 = vmatpush1.bf16.msra.mxu0 %v1812_v19 }
  0x80   :  { %394 = vmatprep.subr.bf16.mxu0 %v1815_v20  ;;  %434 = vmatpush1.bf16.msra.mxu1 %v1818_v21 }
  0x81   :  { %435 = vmatprep.subr.bf16.mxu1 %v1821_v22 }
  0x83   :  { %395 = vmatpush1.bf16.msra.mxu0 %v1824_v23 }
  0x84   :  { %396 = vmatprep.subr.bf16.mxu0 %v1826_v24  ;;  %436 = vmatpush1.bf16.msra.mxu1 %v1829_v25 }
  0x85   :  { %437 = vmatprep.subr.bf16.mxu1 %v1834_v27 }
  0x87   :  { %397 = vmatpush1.bf16.msra.mxu0 %v1832_v26 }
  0x88   :  { %398 = vmatprep.subr.bf16.mxu0 %v1837_v28  ;;  %438 = vmatpush1.bf16.msra.mxu1 %v1840_v29 }
  0x89   :  { %439 = vmatprep.subr.bf16.mxu1 %v1843_v30 }
  0x8b   :  { %399 = vmatpush1.bf16.msra.mxu0 %v1848_v31 }
  0x8c   :  { %496 = vmatprep.subr.bf16.mxu0 %v1761_v1  ;;  %440 = vmatpush1.bf16.msra.mxu1 %v1852_v32 }
  0x8d   :  { %537 = vmatprep.subr.bf16.mxu1 %v1766_v3 }
 0x141   :  { %v307_v35 = vpop.f32.mrb[0].mxu0  ;;  %v348_v41 = vpop.f32.mrb[0].mxu1 }
 0x142   :  { %v355_v36 = vadd.f32 %v307_v35, %v109_v33  ;;  %v309_v37 = vpop.f32.mrb[1].mxu0  ;;  %v350_v44 = vpop.f32.mrb[1].mxu1  ;;  %v357_v50 = vadd.f32 %v348_v41, %v111_v49 }
 0x143   :  { %v356_v39 = vadd.f32 %v309_v37, %v110_v34  ;;  %v311_v40 = vpop.f32.mrb[2].mxu0  ;;  %v358_v46 = vadd.f32 %v350_v44, %v112_v38  ;;  %v352_v47 = vpop.f32.mrb[2].mxu1  ;;  %v379_v37 = vld [vmem:[#allocation2 + $0x20] sm:$0xff]  ;;  %v380_v38 = vld [vmem:[#allocation2 + $0x28] sm:$0xff] }
 0x144   :  { %v359_v42 = vmul.f32 0.5, %v355_v36  ;;  %v312_v43 = vpop.f32.mrb[3].mxu0  ;;  %v353_v48 = vpop.f32.mrb[3].mxu1  ;;  %v361_v51 = vmul.f32 0.5, %v357_v50 }
 0x145   :  { %v360_v45 = vmul.f32 0.5, %v356_v39 }
 0x146   :  { %1435 = vtanh.f32 %v359_v42 }
 0x147   :  { %1437 = vtanh.f32 %v360_v45  ;;  %v382_v45 = vld [vmem:[#allocation2 + $0x38] sm:$0xff] }
 0x148   :  { %1439 = vtanh.f32 %v358_v46 }
 0x149   :  { %1441 = vtanh.f32 %v361_v51 }
 0x150   :  { %v1436_v52 = vpop.eup %1435 }
 0x151   :  { %v1438_v53 = vpop.eup %1437  ;;  %v365_v54 = vmul.f32 0.5, %v1436_v52 }
 0x152   :  { %v366_v55 = vmul.f32 0.5, %v1438_v53  ;;  %v1440_v56 = vpop.eup %1439  ;;  %v381_v53 = vld [vmem:[#allocation2 + $0x30] sm:$0xff] }
 0x153   :  { %v368_v57 = vadd.f32 0.5, %v365_v54  ;;  %v1442_v62 = vpop.eup %1441 }
 0x154   :  { %v369_v58 = vadd.f32 0.5, %v366_v55  ;;  %v367_v63 = vmul.f32 0.5, %v1442_v62 }
 0x155   :  { %v373_v59 = vmul.f32 %v1440_v56, %v368_v57 }
 0x156   :  { %v372_v60 = vmul.f32 0.0, %v369_v58  ;;  %v370_v33 = vadd.f32 0.5, %v367_v63 }
 0x158   :  { %v1895_v61 = vadd.f32 %v373_v59, %v372_v60 }
 0x15a   :  { %1443 = vtanh.f32 %v1895_v61 }
 0x164   :  { %v1444_v34 = vpop.eup %1443 }
 0x165   :  { %v1898_v35 = vmul.f32 %v1444_v34, %v370_v33 }
 0x167   :  { %v383_v36 = vpack.c.bf16 %v1898_v35, %v1898_v35 }
 0x169   :  { %417 = vmatmul.mubr.bf16.vlgmr.msra.gmra.mrb[4].mxu0 %v383_v36  ;;  %458 = vmatmul.mubr.bf16.vlgmr.msra.gmra.mrb[4].mxu1 %v383_v36 }
 0x16a   :  { %497 = vmatpush1.bf16.msra.mxu0 %v1763_v2  ;;  %538 = vmatpush1.bf16.msra.mxu1 %v1771_v5 }
 0x16b   :  { %498 = vmatprep.subr.bf16.mxu0 %v1769_v4  ;;  %539 = vmatprep.subr.bf16.mxu1 %v1776_v7 }
 0x16c   :  { %528 = vmatprep.mubr.bf16.mxu0 %v1677_v0  ;;  %569 = vmatprep.mubr.bf16.mxu1 %v1677_v0 }
 0x16e   :  { %499 = vmatpush1.bf16.msra.mxu0 %v1773_v6  ;;  %540 = vmatpush1.bf16.msra.mxu1 %v1783_v9 }
 0x16f   :  { %500 = vmatprep.subr.bf16.mxu0 %v1780_v8  ;;  %541 = vmatprep.subr.bf16.mxu1 %v1788_v11 }
 0x172   :  { %501 = vmatpush1.bf16.msra.mxu0 %v1785_v10  ;;  %542 = vmatpush1.bf16.msra.mxu1 %v1794_v13 }
 0x173   :  { %502 = vmatprep.subr.bf16.mxu0 %v1791_v12  ;;  %543 = vmatprep.subr.bf16.mxu1 %v1797_v14 }
 0x176   :  { %503 = vmatpush1.bf16.msra.mxu0 %v1800_v15  ;;  %544 = vmatpush1.bf16.msra.mxu1 %v1806_v17 }
 0x177   :  { %504 = vmatprep.subr.bf16.mxu0 %v1803_v16  ;;  %545 = vmatprep.subr.bf16.mxu1 %v1809_v18 }
 0x17a   :  { %505 = vmatpush1.bf16.msra.mxu0 %v1812_v19  ;;  %546 = vmatpush1.bf16.msra.mxu1 %v1818_v21 }
 0x17b   :  { %506 = vmatprep.subr.bf16.mxu0 %v1815_v20  ;;  %547 = vmatprep.subr.bf16.mxu1 %v1821_v22 }
 0x17e   :  { %507 = vmatpush1.bf16.msra.mxu0 %v1824_v23  ;;  %548 = vmatpush1.bf16.msra.mxu1 %v1829_v25 }
 0x17f   :  { %508 = vmatprep.subr.bf16.mxu0 %v1826_v24  ;;  %549 = vmatprep.subr.bf16.mxu1 %v1834_v27 }
 0x182   :  { %509 = vmatpush1.bf16.msra.mxu0 %v1832_v26  ;;  %550 = vmatpush1.bf16.msra.mxu1 %v1840_v29 }
 0x183   :  { %510 = vmatprep.subr.bf16.mxu0 %v1837_v28  ;;  %551 = vmatprep.subr.bf16.mxu1 %v1843_v30 }
 0x186   :  { %511 = vmatpush1.bf16.msra.mxu0 %v1848_v31  ;;  %552 = vmatpush1.bf16.msra.mxu1 %v1852_v32 }
 0x187   :  { %608 = vmatprep.subr.bf16.mxu0 %v1761_v1  ;;  %649 = vmatprep.subr.bf16.mxu1 %v1766_v3 }
 0x23c   :  { %v418_v39 = vpop.f32.mrb[4].mxu0  ;;  %v459_v40 = vpop.f32.mrb[4].mxu1 }
 0x23d   :  { %v466_v41 = vadd.f32 %v418_v39, %v379_v37  ;;  %v420_v42 = vpop.f32.mrb[5].mxu0  ;;  %v461_v43 = vpop.f32.mrb[5].mxu1  ;;  %v468_v54 = vadd.f32 %v459_v40, %v381_v53 }
 0x23e   :  { %v467_v44 = vadd.f32 %v420_v42, %v380_v38  ;;  %v422_v46 = vpop.f32.mrb[6].mxu0  ;;  %v463_v47 = vpop.f32.mrb[6].mxu1  ;;  %v469_v52 = vadd.f32 %v461_v43, %v382_v45  ;;  %v488_v42 = vld [vmem:[#allocation5 + $0x8] sm:$0xff] }
 0x23f   :  { %v470_v48 = vmul.f32 0.5, %v466_v41  ;;  %v423_v49 = vpop.f32.mrb[7].mxu0  ;;  %v464_v50 = vpop.f32.mrb[7].mxu1  ;;  %v472_v55 = vmul.f32 0.5, %v468_v54  ;;  %v377_v41 = vld [vmem:[#allocation5] sm:$0xff]  ;;  %v492_v47 = vld [vmem:[#allocation2 + $0x48] sm:$0xff] }
 0x240   :  { %v471_v51 = vmul.f32 0.5, %v467_v44  ;;  %v1941_v44 = vadd.f32 %v377_v41, %v1898_v35  ;;  %v491_v35 = vld [vmem:[#allocation2 + $0x40] sm:$0xff]  ;;  %v494_v54 = vld [vmem:[#allocation2 + $0x58] sm:$0xff] }
 0x241   :  { %1445 = vtanh.f32 %v470_v48 }
 0x242   :  { %1447 = vtanh.f32 %v471_v51 }
 0x243   :  { %1449 = vtanh.f32 %v469_v52 }
 0x244   :  { %1451 = vtanh.f32 %v472_v55 }
 0x24b   :  { %v1446_v56 = vpop.eup %1445 }
 0x24c   :  { %v476_v57 = vmul.f32 0.5, %v1446_v56  ;;  %v1448_v58 = vpop.eup %1447 }
 0x24d   :  { %v477_v60 = vmul.f32 0.5, %v1448_v58  ;;  %v1450_v62 = vpop.eup %1449 }
 0x24e   :  { %v479_v59 = vadd.f32 0.5, %v476_v57  ;;  %v1452_v37 = vpop.eup %1451 }
 0x24f   :  { %v480_v63 = vadd.f32 0.5, %v477_v60  ;;  %v478_v38 = vmul.f32 0.5, %v1452_v37 }
 0x250   :  { %v484_v33 = vmul.f32 %v1450_v62, %v479_v59 }
 0x251   :  { %v483_v34 = vmul.f32 %v480_v63, %v1895_v61  ;;  %v481_v39 = vadd.f32 0.5, %v478_v38  ;;  %v493_v63 = vld [vmem:[#allocation2 + $0x50] sm:$0xff] }
 0x253   :  { %v1937_v36 = vadd.f32 %v484_v33, %v483_v34 }
 0x255   :  { %1453 = vtanh.f32 %v1937_v36 }
 0x25f   :  { %v1454_v40 = vpop.eup %1453 }
 0x260   :  { %v487_v43 = vmul.f32 %v1454_v40, %v481_v39 }
 0x262   :  { %v1943_v45 = vadd.f32 %v488_v42, %v487_v43  ;;  %v495_v46 = vpack.c.bf16 %v487_v43, %v487_v43 }
 0x264   :  { %v490_v61 = vmax.f32 %v1941_v44, %v1943_v45  ;;  %529 = vmatmul.mubr.bf16.vlgmr.msra.gmra.mrb[8].mxu0 %v495_v46  ;;  %570 = vmatmul.mubr.bf16.vlgmr.msra.gmra.mrb[8].mxu1 %v495_v46  ;;  %v604_v44 = vld [vmem:[#allocation2 + $0x68] sm:$0xff] }
 0x265   :  { %609 = vmatpush1.bf16.msra.mxu0 %v1763_v2  ;;  %650 = vmatpush1.bf16.msra.mxu1 %v1771_v5 }
 0x266   :  { %610 = vmatprep.subr.bf16.mxu0 %v1769_v4  ;;  %651 = vmatprep.subr.bf16.mxu1 %v1776_v7 }
 0x267   :  { %640 = vmatprep.mubr.bf16.mxu0 %v1677_v0  ;;  %681 = vmatprep.mubr.bf16.mxu1 %v1677_v0 }
 0x269   :  { %611 = vmatpush1.bf16.msra.mxu0 %v1773_v6  ;;  %652 = vmatpush1.bf16.msra.mxu1 %v1783_v9 }
 0x26a   :  { %612 = vmatprep.subr.bf16.mxu0 %v1780_v8  ;;  %653 = vmatprep.subr.bf16.mxu1 %v1788_v11 }
 0x26d   :  { %613 = vmatpush1.bf16.msra.mxu0 %v1785_v10  ;;  %654 = vmatpush1.bf16.msra.mxu1 %v1794_v13 }
 0x26e   :  { %614 = vmatprep.subr.bf16.mxu0 %v1791_v12  ;;  %655 = vmatprep.subr.bf16.mxu1 %v1797_v14 }
 0x271   :  { %615 = vmatpush1.bf16.msra.mxu0 %v1800_v15  ;;  %656 = vmatpush1.bf16.msra.mxu1 %v1806_v17 }
 0x272   :  { %616 = vmatprep.subr.bf16.mxu0 %v1803_v16  ;;  %657 = vmatprep.subr.bf16.mxu1 %v1809_v18 }
 0x275   :  { %617 = vmatpush1.bf16.msra.mxu0 %v1812_v19  ;;  %658 = vmatpush1.bf16.msra.mxu1 %v1818_v21 }
 0x276   :  { %618 = vmatprep.subr.bf16.mxu0 %v1815_v20  ;;  %659 = vmatprep.subr.bf16.mxu1 %v1821_v22 }
 0x279   :  { %619 = vmatpush1.bf16.msra.mxu0 %v1824_v23  ;;  %660 = vmatpush1.bf16.msra.mxu1 %v1829_v25 }
 0x27a   :  { %620 = vmatprep.subr.bf16.mxu0 %v1826_v24  ;;  %661 = vmatprep.subr.bf16.mxu1 %v1834_v27 }
 0x27d   :  { %621 = vmatpush1.bf16.msra.mxu0 %v1832_v26  ;;  %662 = vmatpush1.bf16.msra.mxu1 %v1840_v29 }
 0x27e   :  { %622 = vmatprep.subr.bf16.mxu0 %v1837_v28  ;;  %663 = vmatprep.subr.bf16.mxu1 %v1843_v30 }
 0x281   :  { %623 = vmatpush1.bf16.msra.mxu0 %v1848_v31  ;;  %664 = vmatpush1.bf16.msra.mxu1 %v1852_v32 }
 0x282   :  { %720 = vmatprep.subr.bf16.mxu0 %v1761_v1  ;;  %761 = vmatprep.subr.bf16.mxu1 %v1766_v3 }
 0x337   :  { %v530_v48 = vpop.f32.mrb[8].mxu0  ;;  %v571_v49 = vpop.f32.mrb[8].mxu1 }
 0x338   :  { %v578_v50 = vadd.f32 %v530_v48, %v491_v35  ;;  %v532_v51 = vpop.f32.mrb[9].mxu0  ;;  %v573_v52 = vpop.f32.mrb[9].mxu1  ;;  %v580_v33 = vadd.f32 %v571_v49, %v493_v63 }
 0x339   :  { %v579_v53 = vadd.f32 %v532_v51, %v492_v47  ;;  %v534_v55 = vpop.f32.mrb[10].mxu0  ;;  %v575_v56 = vpop.f32.mrb[10].mxu1  ;;  %v581_v62 = vadd.f32 %v573_v52, %v494_v54  ;;  %v600_v52 = vld [vmem:[#allocation5 + $0x10] sm:$0xff] }
 0x33a   :  { %v582_v57 = vmul.f32 0.5, %v578_v50  ;;  %v535_v58 = vpop.f32.mrb[11].mxu0  ;;  %v576_v59 = vpop.f32.mrb[11].mxu1  ;;  %v584_v34 = vmul.f32 0.5, %v580_v33 }
 0x33b   :  { %v583_v60 = vmul.f32 0.5, %v579_v53 }
 0x33c   :  { %1455 = vtanh.f32 %v582_v57 }
 0x33d   :  { %1457 = vtanh.f32 %v583_v60 }
 0x33e   :  { %1459 = vtanh.f32 %v581_v62  ;;  %v606_v62 = vld [vmem:[#allocation2 + $0x78] sm:$0xff] }
 0x33f   :  { %1461 = vtanh.f32 %v584_v34 }
 0x346   :  { %v1456_v37 = vpop.eup %1455 }
 0x347   :  { %v588_v38 = vmul.f32 0.5, %v1456_v37  ;;  %v1458_v39 = vpop.eup %1457 }
 0x348   :  { %v589_v41 = vmul.f32 0.5, %v1458_v39  ;;  %v1460_v42 = vpop.eup %1459 }
 0x349   :  { %v591_v40 = vadd.f32 0.5, %v588_v38  ;;  %v1462_v48 = vpop.eup %1461 }
 0x34a   :  { %v592_v43 = vadd.f32 0.5, %v589_v41  ;;  %v590_v50 = vmul.f32 0.5, %v1462_v48  ;;  %v605_v41 = vld [vmem:[#allocation2 + $0x70] sm:$0xff] }
 0x34b   :  { %v596_v46 = vmul.f32 %v1460_v42, %v591_v40 }
 0x34c   :  { %v595_v35 = vmul.f32 %v592_v43, %v1937_v36  ;;  %v593_v51 = vadd.f32 0.5, %v590_v50  ;;  %v603_v36 = vld [vmem:[#allocation2 + $0x60] sm:$0xff] }
 0x34e   :  { %v1982_v47 = vadd.f32 %v596_v46, %v595_v35 }
 0x350   :  { %1463 = vtanh.f32 %v1982_v47 }
 0x35a   :  { %v1464_v49 = vpop.eup %1463 }
 0x35b   :  { %v599_v53 = vmul.f32 %v1464_v49, %v593_v51 }
 0x35d   :  { %v601_v54 = vadd.f32 %v600_v52, %v599_v53  ;;  %v607_v55 = vpack.c.bf16 %v599_v53, %v599_v53 }
 0x35f   :  { %v1988_v56 = vmax.f32 %v490_v61, %v601_v54  ;;  %641 = vmatmul.mubr.bf16.vlgmr.msra.gmra.mrb[12].mxu0 %v607_v55  ;;  %682 = vmatmul.mubr.bf16.vlgmr.msra.gmra.mrb[12].mxu1 %v607_v55 }
 0x360   :  { %721 = vmatpush1.bf16.msra.mxu0 %v1763_v2  ;;  %762 = vmatpush1.bf16.msra.mxu1 %v1771_v5 }
 0x361   :  { %722 = vmatprep.subr.bf16.mxu0 %v1769_v4  ;;  %763 = vmatprep.subr.bf16.mxu1 %v1776_v7 }
 0x362   :  { %752 = vmatprep.mubr.bf16.mxu0 %v1677_v0  ;;  %793 = vmatprep.mubr.bf16.mxu1 %v1677_v0 }
 0x364   :  { %723 = vmatpush1.bf16.msra.mxu0 %v1773_v6  ;;  %764 = vmatpush1.bf16.msra.mxu1 %v1783_v9 }
 0x365   :  { %724 = vmatprep.subr.bf16.mxu0 %v1780_v8  ;;  %765 = vmatprep.subr.bf16.mxu1 %v1788_v11 }
 0x368   :  { %725 = vmatpush1.bf16.msra.mxu0 %v1785_v10  ;;  %766 = vmatpush1.bf16.msra.mxu1 %v1794_v13 }
 0x369   :  { %726 = vmatprep.subr.bf16.mxu0 %v1791_v12  ;;  %767 = vmatprep.subr.bf16.mxu1 %v1797_v14 }
 0x36c   :  { %727 = vmatpush1.bf16.msra.mxu0 %v1800_v15  ;;  %768 = vmatpush1.bf16.msra.mxu1 %v1806_v17 }
 0x36d   :  { %728 = vmatprep.subr.bf16.mxu0 %v1803_v16  ;;  %769 = vmatprep.subr.bf16.mxu1 %v1809_v18 }
 0x370   :  { %729 = vmatpush1.bf16.msra.mxu0 %v1812_v19  ;;  %770 = vmatpush1.bf16.msra.mxu1 %v1818_v21 }
 0x371   :  { %730 = vmatprep.subr.bf16.mxu0 %v1815_v20  ;;  %771 = vmatprep.subr.bf16.mxu1 %v1821_v22 }
 0x374   :  { %731 = vmatpush1.bf16.msra.mxu0 %v1824_v23  ;;  %772 = vmatpush1.bf16.msra.mxu1 %v1829_v25 }
 0x375   :  { %732 = vmatprep.subr.bf16.mxu0 %v1826_v24  ;;  %773 = vmatprep.subr.bf16.mxu1 %v1834_v27 }
 0x378   :  { %733 = vmatpush1.bf16.msra.mxu0 %v1832_v26  ;;  %774 = vmatpush1.bf16.msra.mxu1 %v1840_v29 }
 0x379   :  { %734 = vmatprep.subr.bf16.mxu0 %v1837_v28  ;;  %775 = vmatprep.subr.bf16.mxu1 %v1843_v30 }
 0x37c   :  { %735 = vmatpush1.bf16.msra.mxu0 %v1848_v31  ;;  %776 = vmatpush1.bf16.msra.mxu1 %v1852_v32 }
 0x37d   :  { %832 = vmatprep.subr.bf16.mxu0 %v1761_v1  ;;  %873 = vmatprep.subr.bf16.mxu1 %v1766_v3 }
 0x432   :  { %v642_v45 = vpop.f32.mrb[12].mxu0  ;;  %v683_v61 = vpop.f32.mrb[12].mxu1 }
 0x433   :  { %v690_v57 = vadd.f32 %v642_v45, %v603_v36  ;;  %v644_v58 = vpop.f32.mrb[13].mxu0  ;;  %v685_v59 = vpop.f32.mrb[13].mxu1  ;;  %v692_v42 = vadd.f32 %v683_v61, %v605_v41  ;;  %v718_v41 = vld [vmem:[#allocation2 + $0x98] sm:$0xff] }
 0x434   :  { %v691_v60 = vadd.f32 %v644_v58, %v604_v44  ;;  %v646_v63 = vpop.f32.mrb[14].mxu0  ;;  %v687_v33 = vpop.f32.mrb[14].mxu1  ;;  %v693_v40 = vadd.f32 %v685_v59, %v606_v62 }
 0x435   :  { %v694_v34 = vmul.f32 0.5, %v690_v57  ;;  %v647_v37 = vpop.f32.mrb[15].mxu0  ;;  %v688_v38 = vpop.f32.mrb[15].mxu1  ;;  %v696_v43 = vmul.f32 0.5, %v692_v42  ;;  %v712_v57 = vld [vmem:[#allocation5 + $0x18] sm:$0xff]  ;;  %v716_v63 = vld [vmem:[#allocation2 + $0x88] sm:$0xff] }
 0x436   :  { %v695_v39 = vmul.f32 0.5, %v691_v60 }
 0x437   :  { %1465 = vtanh.f32 %v694_v34 }
 0x438   :  { %1467 = vtanh.f32 %v695_v39 }
 0x439   :  { %1469 = vtanh.f32 %v693_v40 }
 0x43a   :  { %1471 = vtanh.f32 %v696_v43 }
 0x441   :  { %v1466_v46 = vpop.eup %1465 }
 0x442   :  { %v700_v35 = vmul.f32 0.5, %v1466_v46  ;;  %v1468_v48 = vpop.eup %1467 }
 0x443   :  { %v701_v51 = vmul.f32 0.5, %v1468_v48  ;;  %v1470_v49 = vpop.eup %1469 }
 0x444   :  { %v703_v50 = vadd.f32 0.5, %v700_v35  ;;  %v1472_v36 = vpop.eup %1471 }
 0x445   :  { %v704_v52 = vadd.f32 0.5, %v701_v51  ;;  %v702_v44 = vmul.f32 0.5, %v1472_v36 }
 0x446   :  { %v708_v53 = vmul.f32 %v1470_v49, %v703_v50 }
 0x447   :  { %v707_v54 = vmul.f32 %v704_v52, %v1982_v47  ;;  %v705_v45 = vadd.f32 0.5, %v702_v44  ;;  %v715_v47 = vld [vmem:[#allocation2 + $0x80] sm:$0xff] }
 0x449   :  { %v2025_v55 = vadd.f32 %v708_v53, %v707_v54 }
 0x44b   :  { %1473 = vtanh.f32 %v2025_v55 }
 0x455   :  { %v1474_v61 = vpop.eup %1473 }
 0x456   :  { %v711_v58 = vmul.f32 %v1474_v61, %v705_v45 }
 0x458   :  { %v2028_v59 = vadd.f32 %v712_v57, %v711_v58  ;;  %v719_v60 = vpack.c.bf16 %v711_v58, %v711_v58 }
 0x45a   :  { %v714_v62 = vmax.f32 %v1988_v56, %v2028_v59  ;;  %753 = vmatmul.mubr.bf16.vlgmr.msra.gmra.mrb[16].mxu0 %v719_v60  ;;  %794 = vmatmul.mubr.bf16.vlgmr.msra.gmra.mrb[16].mxu1 %v719_v60 }
 0x45b   :  { %833 = vmatpush1.bf16.msra.mxu0 %v1763_v2  ;;  %874 = vmatpush1.bf16.msra.mxu1 %v1771_v5 }
 0x45c   :  { %834 = vmatprep.subr.bf16.mxu0 %v1769_v4  ;;  %875 = vmatprep.subr.bf16.mxu1 %v1776_v7 }
 0x45d   :  { %864 = vmatprep.mubr.bf16.mxu0 %v1677_v0  ;;  %905 = vmatprep.mubr.bf16.mxu1 %v1677_v0 }
 0x45f   :  { %835 = vmatpush1.bf16.msra.mxu0 %v1773_v6  ;;  %876 = vmatpush1.bf16.msra.mxu1 %v1783_v9 }
 0x460   :  { %836 = vmatprep.subr.bf16.mxu0 %v1780_v8  ;;  %877 = vmatprep.subr.bf16.mxu1 %v1788_v11 }
 0x463   :  { %837 = vmatpush1.bf16.msra.mxu0 %v1785_v10  ;;  %878 = vmatpush1.bf16.msra.mxu1 %v1794_v13 }
 0x464   :  { %838 = vmatprep.subr.bf16.mxu0 %v1791_v12  ;;  %879 = vmatprep.subr.bf16.mxu1 %v1797_v14 }
 0x467   :  { %839 = vmatpush1.bf16.msra.mxu0 %v1800_v15  ;;  %880 = vmatpush1.bf16.msra.mxu1 %v1806_v17 }
 0x468   :  { %840 = vmatprep.subr.bf16.mxu0 %v1803_v16  ;;  %881 = vmatprep.subr.bf16.mxu1 %v1809_v18 }
 0x46b   :  { %841 = vmatpush1.bf16.msra.mxu0 %v1812_v19  ;;  %882 = vmatpush1.bf16.msra.mxu1 %v1818_v21 }
 0x46c   :  { %842 = vmatprep.subr.bf16.mxu0 %v1815_v20  ;;  %883 = vmatprep.subr.bf16.mxu1 %v1821_v22 }
 0x46f   :  { %843 = vmatpush1.bf16.msra.mxu0 %v1824_v23  ;;  %884 = vmatpush1.bf16.msra.mxu1 %v1829_v25 }
 0x470   :  { %844 = vmatprep.subr.bf16.mxu0 %v1826_v24  ;;  %885 = vmatprep.subr.bf16.mxu1 %v1834_v27 }
 0x473   :  { %845 = vmatpush1.bf16.msra.mxu0 %v1832_v26  ;;  %886 = vmatpush1.bf16.msra.mxu1 %v1840_v29 }
 0x474   :  { %846 = vmatprep.subr.bf16.mxu0 %v1837_v28  ;;  %887 = vmatprep.subr.bf16.mxu1 %v1843_v30 }
 0x477   :  { %847 = vmatpush1.bf16.msra.mxu0 %v1848_v31  ;;  %888 = vmatpush1.bf16.msra.mxu1 %v1852_v32 }
 0x478   :  { %944 = vmatprep.subr.bf16.mxu0 %v1761_v1  ;;  %985 = vmatprep.subr.bf16.mxu1 %v1766_v3  ;;  %v717_v1 = vld [vmem:[#allocation2 + $0x90] sm:$0xff] }
 0x52d   :  { %v754_v33 = vpop.f32.mrb[16].mxu0  ;;  %v795_v34 = vpop.f32.mrb[16].mxu1 }
 0x52e   :  { %v802_v37 = vadd.f32 %v754_v33, %v715_v47  ;;  %v756_v38 = vpop.f32.mrb[17].mxu0  ;;  %v797_v39 = vpop.f32.mrb[17].mxu1  ;;  %v804_v3 = vadd.f32 %v795_v34, %v717_v1  ;;  %v1518_v1 = vld [vmem:[#allocation7 + $0x8] ss:$16 sps:$4 sm:$0xff]  }
 0x52f   :  { %v803_v40 = vadd.f32 %v756_v38, %v716_v63  ;;  %v758_v42 = vpop.f32.mrb[18].mxu0  ;;  %v799_v43 = vpop.f32.mrb[18].mxu1  ;;  %v805_v51 = vadd.f32 %v797_v39, %v718_v41 }
 0x530   :  { %v806_v46 = vmul.f32 0.5, %v802_v37  ;;  %v759_v35 = vpop.f32.mrb[19].mxu0  ;;  %v800_v48 = vpop.f32.mrb[19].mxu1  ;;  %v808_v49 = vmul.f32 0.5, %v804_v3  ;;  %v824_v37 = vld [vmem:[#allocation5 + $0x20] sm:$0xff]  ;;  %v936_v43 = vld [vmem:[#allocation5 + $0x28] sm:$0xff] }
 0x531   :  { %v807_v50 = vmul.f32 0.5, %v803_v40  ;;  %v1519_v3 = vld [vmem:[#allocation7 + $0x24] ss:$16 sps:$4 sm:$0xff]  }
 0x532   :  { %1475 = vtanh.f32 %v806_v46 }
 0x533   :  { %1477 = vtanh.f32 %v807_v50 }
 0x534   :  { %1479 = vtanh.f32 %v805_v51  ;;  %v1517_v51 = vld [vmem:[#allocation7] ss:$16 sps:$4 sm:$0xff]  }
 0x535   :  { %1481 = vtanh.f32 %v808_v49  ;;  %v1520_v49 = vld [vmem:[#allocation7 + $0x2c] ss:$16 sps:$4 sm:$0xff]  }
 0x53c   :  { %v1476_v52 = vpop.eup %1475 }
 0x53d   :  { %v812_v53 = vmul.f32 0.5, %v1476_v52  ;;  %v1478_v54 = vpop.eup %1477  ;;  %v1521_v52 = vld [vmem:[#allocation7 + $0x20] ss:$16 sps:$4 sm:$0xff]  }
 0x53e   :  { %v813_v44 = vmul.f32 0.5, %v1478_v54  ;;  %v1480_v45 = vpop.eup %1479  ;;  %v1523_v54 = vld [vmem:[#allocation7 + $0x44] ss:$16 sps:$4 sm:$0xff]  }
 0x53f   :  { %v815_v36 = vadd.f32 0.5, %v812_v53  ;;  %v1482_v47 = vpop.eup %1481  ;;  %v1522_v53 = vld [vmem:[#allocation7 + $0x28] ss:$16 sps:$4 sm:$0xff]  }
 0x540   :  { %v816_v61 = vadd.f32 0.5, %v813_v44  ;;  %v814_v63 = vmul.f32 0.5, %v1482_v47  ;;  %v1525_v44 = vld [vmem:[#allocation7 + $0x40] ss:$16 sps:$4 sm:$0xff]   ;;  %v1532_v47 = vld [vmem:[#allocation7 + $0x8c] ss:$16 sps:$4 sm:$0xff]  }
 0x541   :  { %v820_v57 = vmul.f32 %v1480_v45, %v815_v36  ;;  %v1524_v36 = vld [vmem:[#allocation7 + $0x4c] ss:$16 sps:$4 sm:$0xff]   ;;  %v1526_v45 = vld [vmem:[#allocation7 + $0x48] ss:$16 sps:$4 sm:$0xff]  }
 0x542   :  { %v819_v58 = vmul.f32 %v816_v61, %v2025_v55  ;;  %v817_v33 = vadd.f32 0.5, %v814_v63  ;;  %v1527_v61 = vld [vmem:[#allocation7 + $0x64] ss:$16 sps:$4 sm:$0xff]   ;;  %v1533_v63 = vld [vmem:[#allocation7 + $0x80] ss:$16 sps:$4 sm:$0xff]  }
 0x544   :  { %v2067_v60 = vadd.f32 %v820_v57, %v819_v58  ;;  %v1528_v57 = vld [vmem:[#allocation7 + $0x6c] ss:$16 sps:$4 sm:$0xff]   ;;  %v1529_v58 = vld [vmem:[#allocation7 + $0x60] ss:$16 sps:$4 sm:$0xff]  }
 0x546   :  { %1483 = vtanh.f32 %v2067_v60 }
 0x550   :  { %v1484_v34 = vpop.eup %1483 }
 0x551   :  { %v823_v38 = vmul.f32 %v1484_v34, %v817_v33  ;;  %v1534_v33 = vld [vmem:[#allocation7 + $0x88] ss:$16 sps:$4 sm:$0xff]   ;;  %v1535_v34 = vld [vmem:[#allocation7 + $0xa4] ss:$16 sps:$4 sm:$0xff]  }
 0x553   :  { %v825_v39 = vadd.f32 %v824_v37, %v823_v38  ;;  %v831_v40 = vpack.c.bf16 %v823_v38, %v823_v38  ;;  %v1536_v37 = vld [vmem:[#allocation7 + $0xac] ss:$16 sps:$4 sm:$0xff]   ;;  %v1537_v38 = vld [vmem:[#allocation7 + $0xa0] ss:$16 sps:$4 sm:$0xff]  }
 0x555   :  { %v2073_v41 = vmax.f32 %v714_v62, %v825_v39  ;;  %865 = vmatmul.mubr.bf16.vlgmr.msra.gmra.mrb[20].mxu0 %v831_v40  ;;  %906 = vmatmul.mubr.bf16.vlgmr.msra.gmra.mrb[20].mxu1 %v831_v40  ;;  %v1538_v39 = vld [vmem:[#allocation7 + $0xa8] ss:$16 sps:$4 sm:$0xff]   ;;  %v1539_v40 = vld [vmem:[#allocation7 + $0xc4] ss:$16 sps:$4 sm:$0xff]  }
 0x556   :  { %945 = vmatpush1.bf16.msra.mxu0 %v1763_v2  ;;  %986 = vmatpush1.bf16.msra.mxu1 %v1771_v5  ;;  %v1515_v2 = vld [vmem:[#allocation7 + $0x4] ss:$16 sps:$4 sm:$0xff]  }
 0x557   :  { %946 = vmatprep.subr.bf16.mxu0 %v1769_v4  ;;  %987 = vmatprep.subr.bf16.mxu1 %v1776_v7  ;;  %v1516_v4 = vld [vmem:[#allocation7 + $0xc] ss:$16 sps:$4 sm:$0xff]   ;;  %v827_v5 = vld [vmem:[#allocation2 + $0xa0] sm:$0xff] }
 0x558   :  { %976 = vmatprep.mubr.bf16.mxu0 %v1677_v0  ;;  %1017 = vmatprep.mubr.bf16.mxu1 %v1677_v0 }
 0x55a   :  { %947 = vmatpush1.bf16.msra.mxu0 %v1773_v6  ;;  %988 = vmatpush1.bf16.msra.mxu1 %v1783_v9  ;;  %v828_v6 = vld [vmem:[#allocation2 + $0xa8] sm:$0xff] }
 0x55b   :  { %948 = vmatprep.subr.bf16.mxu0 %v1780_v8  ;;  %989 = vmatprep.subr.bf16.mxu1 %v1788_v11 }
 0x55e   :  { %949 = vmatpush1.bf16.msra.mxu0 %v1785_v10  ;;  %990 = vmatpush1.bf16.msra.mxu1 %v1794_v13  ;;  %v830_v13 = vld [vmem:[#allocation2 + $0xb8] sm:$0xff] }
 0x55f   :  { %950 = vmatprep.subr.bf16.mxu0 %v1791_v12  ;;  %991 = vmatprep.subr.bf16.mxu1 %v1797_v14 }
 0x562   :  { %951 = vmatpush1.bf16.msra.mxu0 %v1800_v15  ;;  %992 = vmatpush1.bf16.msra.mxu1 %v1806_v17 }
 0x563   :  { %952 = vmatprep.subr.bf16.mxu0 %v1803_v16  ;;  %993 = vmatprep.subr.bf16.mxu1 %v1809_v18 }
 0x566   :  { %953 = vmatpush1.bf16.msra.mxu0 %v1812_v19  ;;  %994 = vmatpush1.bf16.msra.mxu1 %v1818_v21  ;;  %v829_v21 = vld [vmem:[#allocation2 + $0xb0] sm:$0xff] }
 0x567   :  { %954 = vmatprep.subr.bf16.mxu0 %v1815_v20  ;;  %995 = vmatprep.subr.bf16.mxu1 %v1821_v22 }
 0x56a   :  { %955 = vmatpush1.bf16.msra.mxu0 %v1824_v23  ;;  %996 = vmatpush1.bf16.msra.mxu1 %v1829_v25 }
 0x56b   :  { %956 = vmatprep.subr.bf16.mxu0 %v1826_v24  ;;  %997 = vmatprep.subr.bf16.mxu1 %v1834_v27 }
 0x56e   :  { %957 = vmatpush1.bf16.msra.mxu0 %v1832_v26  ;;  %998 = vmatpush1.bf16.msra.mxu1 %v1840_v29 }
 0x56f   :  { %958 = vmatprep.subr.bf16.mxu0 %v1837_v28  ;;  %999 = vmatprep.subr.bf16.mxu1 %v1843_v30 }
 0x572   :  { %959 = vmatpush1.bf16.msra.mxu0 %v1848_v31  ;;  %1000 = vmatpush1.bf16.msra.mxu1 %v1852_v32 }
 0x573   :  { %1056 = vmatprep.subr.bf16.mxu0 %v1515_v2  ;;  %1097 = vmatprep.subr.bf16.mxu1 %v1516_v4  ;;  %v1540_v2 = vld [vmem:[#allocation7 + $0xcc] ss:$16 sps:$4 sm:$0xff]   ;;  %v1541_v4 = vld [vmem:[#allocation7 + $0xc0] ss:$16 sps:$4 sm:$0xff]  }
 0x628   :  { %v866_v7 = vpop.f32.mrb[20].mxu0  ;;  %v907_v8 = vpop.f32.mrb[20].mxu1 }
 0x629   :  { %v914_v9 = vadd.f32 %v866_v7, %v827_v5  ;;  %v868_v10 = vpop.f32.mrb[21].mxu0  ;;  %v909_v11 = vpop.f32.mrb[21].mxu1  ;;  %v916_v22 = vadd.f32 %v907_v8, %v829_v21  ;;  %v1542_v5 = vld [vmem:[#allocation7 + $0xc8] ss:$16 sps:$4 sm:$0xff]   ;;  %v1544_v7 = vld [vmem:[#allocation7 + $0xec] ss:$16 sps:$4 sm:$0xff]  }
 0x62a   :  { %v915_v12 = vadd.f32 %v868_v10, %v828_v6  ;;  %v870_v14 = vpop.f32.mrb[22].mxu0  ;;  %v911_v15 = vpop.f32.mrb[22].mxu1  ;;  %v917_v20 = vadd.f32 %v909_v11, %v830_v13  ;;  %v1543_v6 = vld [vmem:[#allocation7 + $0xe4] ss:$16 sps:$4 sm:$0xff]   ;;  %v1545_v8 = vld [vmem:[#allocation7 + $0xe0] ss:$16 sps:$4 sm:$0xff]  }
 0x62b   :  { %v918_v16 = vmul.f32 0.5, %v914_v9  ;;  %v871_v17 = vpop.f32.mrb[23].mxu0  ;;  %v912_v18 = vpop.f32.mrb[23].mxu1  ;;  %v920_v23 = vmul.f32 0.5, %v916_v22  ;;  %v1546_v9 = vld [vmem:[#allocation7 + $0xe8] ss:$16 sps:$4 sm:$0xff]  }
 0x62c   :  { %v919_v19 = vmul.f32 0.5, %v915_v12  ;;  %v939_v10 = vld [vmem:[#allocation2 + $0xc0] sm:$0xff]  ;;  %v940_v11 = vld [vmem:[#allocation2 + $0xc8] sm:$0xff]  ;;  %v942_v18 = vld [vmem:[#allocation2 + $0xd8] sm:$0xff] }
 0x62d   :  { %1485 = vtanh.f32 %v918_v16 }
 0x62e   :  { %1487 = vtanh.f32 %v919_v19 }
 0x62f   :  { %1489 = vtanh.f32 %v917_v20 }
 0x630   :  { %1491 = vtanh.f32 %v920_v23 }
 0x637   :  { %v1486_v24 = vpop.eup %1485 }
 0x638   :  { %v924_v25 = vmul.f32 0.5, %v1486_v24  ;;  %v1488_v26 = vpop.eup %1487 }
 0x639   :  { %v925_v28 = vmul.f32 0.5, %v1488_v26  ;;  %v1490_v29 = vpop.eup %1489  ;;  %v941_v26 = vld [vmem:[#allocation2 + $0xd0] sm:$0xff] }
 0x63a   :  { %v927_v27 = vadd.f32 0.5, %v924_v25  ;;  %v1492_v55 = vpop.eup %1491 }
 0x63b   :  { %v928_v30 = vadd.f32 0.5, %v925_v28  ;;  %v926_v59 = vmul.f32 0.5, %v1492_v55 }
 0x63c   :  { %v932_v31 = vmul.f32 %v1490_v29, %v927_v27 }
 0x63d   :  { %v931_v32 = vmul.f32 %v928_v30, %v2067_v60  ;;  %v929_v62 = vadd.f32 0.5, %v926_v59  ;;  %v1530_v60 = vld [vmem:[#allocation7 + $0x68] ss:$16 sps:$4 sm:$0xff]  }
 0x63f   :  { %v2108_v56 = vadd.f32 %v932_v31, %v931_v32 }
 0x641   :  { %1493 = vtanh.f32 %v2108_v56 }
 0x64b   :  { %v1494_v42 = vpop.eup %1493 }
 0x64c   :  { %v935_v46 = vmul.f32 %v1494_v42, %v929_v62 }
 0x64e   :  { %v2111_v35 = vadd.f32 %v936_v43, %v935_v46  ;;  %v943_v48 = vpack.c.bf16 %v935_v46, %v935_v46 }
 0x650   :  { %977 = vmatmul.mubr.bf16.vlgmr.msra.gmra.mrb[24].mxu0 %v943_v48  ;;  %1018 = vmatmul.mubr.bf16.vlgmr.msra.gmra.mrb[24].mxu1 %v943_v48  ;;  %v938_v50 = vmax.f32 %v2073_v41, %v2111_v35  ;;  %v1432_v41 = vld [vmem:[#allocation8 + $0x28] sm:$0xff]   ;;  %v1433_v35 = vld [vmem:[#allocation8 + $0x30] sm:$0xff]  }
 0x651   :  { %1057 = vmatpush1.bf16.msra.mxu0 %v1517_v51  ;;  %1098 = vmatpush1.bf16.msra.mxu1 %v1518_v1 }
 0x652   :  { %1058 = vmatprep.subr.bf16.mxu0 %v1519_v3  ;;  %1099 = vmatprep.subr.bf16.mxu1 %v1520_v49  ;;  %v1048_v49 = vld [vmem:[#allocation5 + $0x30] sm:$0xff] }
 0x653   :  { %1088 = vmatprep.mubr.bf16.mxu0 %v1677_v0  ;;  %1129 = vmatprep.mubr.bf16.mxu1 %v1677_v0  ;;  %v1531_v0 = vld [vmem:[#allocation7 + $0x84] ss:$16 sps:$4 sm:$0xff]  }
 0x655   :  { %1059 = vmatpush1.bf16.msra.mxu0 %v1521_v52  ;;  %1100 = vmatpush1.bf16.msra.mxu1 %v1522_v53 }
 0x656   :  { %1060 = vmatprep.subr.bf16.mxu0 %v1523_v54  ;;  %1101 = vmatprep.subr.bf16.mxu1 %v1524_v36 }
 0x659   :  { %1061 = vmatpush1.bf16.msra.mxu0 %v1525_v44  ;;  %1102 = vmatpush1.bf16.msra.mxu1 %v1526_v45  ;;  %v1678_v44 = vmov 0.0   ;;  %v1428_v45 = vld [vmem:[#allocation8 + $0x8] sm:$0xff]  }
 0x65a   :  { %1062 = vmatprep.subr.bf16.mxu0 %v1527_v61  ;;  %1103 = vmatprep.subr.bf16.mxu1 %v1528_v57  ;;  %v1429_v61 = vld [vmem:[#allocation8 + $0x10] sm:$0xff]   ;;  %v1430_v57 = vld [vmem:[#allocation8 + $0x18] sm:$0xff]  }
 0x65d   :  { %1063 = vmatpush1.bf16.msra.mxu0 %v1529_v58  ;;  %1104 = vmatpush1.bf16.msra.mxu1 %v1530_v60  ;;  %v1431_v58 = vld [vmem:[#allocation8 + $0x20] sm:$0xff]  }
 0x65e   :  { %1064 = vmatprep.subr.bf16.mxu0 %v1531_v0  ;;  %1105 = vmatprep.subr.bf16.mxu1 %v1532_v47  ;;  %v1051_v60 = vld [vmem:[#allocation2 + $0xe0] sm:$0xff]  ;;  %v1052_v0 = vld [vmem:[#allocation2 + $0xe8] sm:$0xff] }
 0x661   :  { %1065 = vmatpush1.bf16.msra.mxu0 %v1533_v63  ;;  %1106 = vmatpush1.bf16.msra.mxu1 %v1534_v33 }
 0x662   :  { %1066 = vmatprep.subr.bf16.mxu0 %v1535_v34  ;;  %1107 = vmatprep.subr.bf16.mxu1 %v1536_v37 }
 0x665   :  { %1067 = vmatpush1.bf16.msra.mxu0 %v1537_v38  ;;  %1108 = vmatpush1.bf16.msra.mxu1 %v1538_v39  ;;  %v1054_v39 = vld [vmem:[#allocation2 + $0xf8] sm:$0xff] }
 0x666   :  { %1068 = vmatprep.subr.bf16.mxu0 %v1539_v40  ;;  %1109 = vmatprep.subr.bf16.mxu1 %v1540_v2 }
 0x669   :  { %1069 = vmatpush1.bf16.msra.mxu0 %v1541_v4  ;;  %1110 = vmatpush1.bf16.msra.mxu1 %v1542_v5 }
 0x66a   :  { %1070 = vmatprep.subr.bf16.mxu0 %v1543_v6  ;;  %1111 = vmatprep.subr.bf16.mxu1 %v1544_v7 }
 0x66d   :  { %1071 = vmatpush1.bf16.msra.mxu0 %v1545_v8  ;;  %1112 = vmatpush1.bf16.msra.mxu1 %v1546_v9  ;;  %v1053_v9 = vld [vmem:[#allocation2 + $0xf0] sm:$0xff] }
 0x66e   :  { %1343 = vmatprep.subr.bf16.mxu0 %v1678_v44 }
 0x723   :  { %v978_v12 = vpop.f32.mrb[24].mxu0  ;;  %v1019_v13 = vpop.f32.mrb[24].mxu1 }
 0x724   :  { %v1026_v14 = vadd.f32 %v978_v12, %v939_v10  ;;  %v980_v15 = vpop.f32.mrb[25].mxu0  ;;  %v1021_v16 = vpop.f32.mrb[25].mxu1  ;;  %v1028_v27 = vadd.f32 %v1019_v13, %v941_v26  ;;  %v1160_v26 = vld [vmem:[#allocation5 + $0x38] sm:$0xff] }
 0x725   :  { %v1027_v17 = vadd.f32 %v980_v15, %v940_v11  ;;  %v982_v19 = vpop.f32.mrb[26].mxu0  ;;  %v1023_v20 = vpop.f32.mrb[26].mxu1  ;;  %v1029_v25 = vadd.f32 %v1021_v16, %v942_v18 }
 0x726   :  { %v1030_v21 = vmul.f32 0.5, %v1026_v14  ;;  %v983_v22 = vpop.f32.mrb[27].mxu0  ;;  %v1024_v23 = vpop.f32.mrb[27].mxu1  ;;  %v1032_v28 = vmul.f32 0.5, %v1028_v27 }
 0x727   :  { %v1031_v24 = vmul.f32 0.5, %v1027_v17 }
 0x728   :  { %1495 = vtanh.f32 %v1030_v21 }
 0x729   :  { %1497 = vtanh.f32 %v1031_v24 }
 0x72a   :  { %1499 = vtanh.f32 %v1029_v25 }
 0x72b   :  { %1501 = vtanh.f32 %v1032_v28 }
 0x732   :  { %v1496_v29 = vpop.eup %1495 }
 0x733   :  { %v1036_v30 = vmul.f32 0.5, %v1496_v29  ;;  %v1498_v31 = vpop.eup %1497 }
 0x734   :  { %v1037_v55 = vmul.f32 0.5, %v1498_v31  ;;  %v1500_v59 = vpop.eup %1499  ;;  %v1325_v31 = vld [vmem:[%s2147_s4] ss:$0 sm:$0xff] }
 0x735   :  { %v1039_v32 = vadd.f32 0.5, %v1036_v30  ;;  %v1502_v48 = vpop.eup %1501 }
 0x736   :  { %v1040_v62 = vadd.f32 0.5, %v1037_v55  ;;  %v1038_v51 = vmul.f32 0.5, %v1502_v48 }
 0x737   :  { %v1044_v42 = vmul.f32 %v1500_v59, %v1039_v32 }
 0x738   :  { %v1043_v43 = vmul.f32 %v1040_v62, %v2108_v56  ;;  %v1041_v1 = vadd.f32 0.5, %v1038_v51  ;;  %v1427_v56 = vld [vmem:[#allocation8] sm:$0xff]  }
 0x73a   :  { %v2118_v46 = vadd.f32 %v1044_v42, %v1043_v43 }
 0x73c   :  { %1503 = vtanh.f32 %v2118_v46 }
 0x746   :  { %v1504_v3 = vpop.eup %1503 }
 0x747   :  { %v1047_v52 = vmul.f32 %v1504_v3, %v1041_v1 }
 0x749   :  { %v1049_v53 = vadd.f32 %v1048_v49, %v1047_v52  ;;  %v1055_v54 = vpack.c.bf16 %v1047_v52, %v1047_v52 }
 0x74b   :  { %1089 = vmatmul.mubr.bf16.vlgmr.msra.gmra.mrb[28].mxu0 %v1055_v54  ;;  %1130 = vmatmul.mubr.bf16.vlgmr.msra.gmra.mrb[28].mxu1 %v1055_v54  ;;  %v2124_v36 = vmax.f32 %v938_v50, %v1049_v53  ;;  %v1434_v50 = vld [vmem:[#allocation8 + $0x38] sm:$0xff]  }
 0x74c   :  { %1344 = vmatpush3.bf16.msra.mxu0 %v1427_v56  ;;  %1359 = vmatprep.mubr.msk.bf16.mxu0 %vm1679_vm0, %v1678_v44 }
 0x74d   :  { %1345 = vmatprep.subr.bf16.mxu0 %v1678_v44 }
 0x750   :  { %1346 = vmatpush3.bf16.msra.mxu0 %v1428_v45 }
 0x751   :  { %1347 = vmatprep.subr.bf16.mxu0 %v1678_v44 }
 0x754   :  { %1348 = vmatpush3.bf16.msra.mxu0 %v1429_v61 }
 0x755   :  { %1349 = vmatprep.subr.bf16.mxu0 %v1678_v44 }
 0x758   :  { %1350 = vmatpush3.bf16.msra.mxu0 %v1430_v57 }
 0x759   :  { %1351 = vmatprep.subr.bf16.mxu0 %v1678_v44 }
 0x75c   :  { %1352 = vmatpush3.bf16.msra.mxu0 %v1431_v58 }
 0x75d   :  { %1353 = vmatprep.subr.bf16.mxu0 %v1678_v44 }
 0x760   :  { %1354 = vmatpush3.bf16.msra.mxu0 %v1432_v41 }
 0x761   :  { %1355 = vmatprep.subr.bf16.mxu0 %v1678_v44 }
 0x764   :  { %1356 = vmatpush3.bf16.msra.mxu0 %v1433_v35 }
 0x765   :  { %1357 = vmatprep.subr.bf16.mxu0 %v1678_v44 }
 0x768   :  { %1358 = vmatpush3.bf16.msra.mxu0 %v1434_v50 }
 0x81e   :  { %v1090_v47 = vpop.f32.mrb[28].mxu0  ;;  %v1131_v63 = vpop.f32.mrb[28].mxu1 }
 0x81f   :  { %v1138_v33 = vadd.f32 %v1090_v47, %v1051_v60  ;;  %v1092_v34 = vpop.f32.mrb[29].mxu0  ;;  %v1133_v37 = vpop.f32.mrb[29].mxu1  ;;  %v1140_v10 = vadd.f32 %v1131_v63, %v1053_v9 }
 0x820   :  { %v1139_v38 = vadd.f32 %v1092_v34, %v1052_v0  ;;  %v1094_v40 = vpop.f32.mrb[30].mxu0  ;;  %v1135_v2 = vpop.f32.mrb[30].mxu1  ;;  %v1141_v8 = vadd.f32 %v1133_v37, %v1054_v39 }
 0x821   :  { %v1142_v4 = vmul.f32 0.5, %v1138_v33  ;;  %v1095_v5 = vpop.f32.mrb[31].mxu0  ;;  %v1136_v6 = vpop.f32.mrb[31].mxu1  ;;  %v1144_v11 = vmul.f32 0.5, %v1140_v10 }
 0x822   :  { %v1143_v7 = vmul.f32 0.5, %v1139_v38 }
 0x823   :  { %1505 = vtanh.f32 %v1142_v4 }
 0x824   :  { %1507 = vtanh.f32 %v1143_v7 }
 0x825   :  { %1509 = vtanh.f32 %v1141_v8 }
 0x826   :  { %1511 = vtanh.f32 %v1144_v11 }
 0x82d   :  { %v1506_v12 = vpop.eup %1505 }
 0x82e   :  { %v1148_v13 = vmul.f32 0.5, %v1506_v12  ;;  %v1508_v14 = vpop.eup %1507 }
 0x82f   :  { %v1149_v16 = vmul.f32 0.5, %v1508_v14  ;;  %v1510_v17 = vpop.eup %1509 }
 0x830   :  { %v1151_v15 = vadd.f32 0.5, %v1148_v13  ;;  %v1512_v22 = vpop.eup %1511 }
 0x831   :  { %v1152_v18 = vadd.f32 0.5, %v1149_v16  ;;  %v1150_v23 = vmul.f32 0.5, %v1512_v22 }
 0x832   :  { %v1156_v19 = vmul.f32 %v1510_v17, %v1151_v15 }
 0x833   :  { %v1155_v20 = vmul.f32 %v1152_v18, %v2118_v46  ;;  %v1153_v24 = vadd.f32 0.5, %v1150_v23 }
 0x835   :  { %v1157_v21 = vadd.f32 %v1156_v19, %v1155_v20 }
 0x837   :  { %1513 = vtanh.f32 %v1157_v21 }
 0x841   :  { %v1514_v25 = vpop.eup %1513 }
 0x842   :  { %v1159_v27 = vmul.f32 %v1514_v25, %v1153_v24 }
 0x844   :  { %v1161_v28 = vadd.f32 %v1160_v26, %v1159_v27 }
 0x846   :  { %v1162_v29 = vmax.f32 %v2124_v36, %v1161_v28 }
 0x848   :  { %v1163_v30 = vpack.c.bf16 %v1162_v29, %v1162_v29 }
 0x84a   :  { %1360 = vmatmul.mubr.bf16.vlgmr.msra.gmra.mrb[32].mxu0 %v1163_v30 }
 0x91d   :  { %v1269_v32 = vpop.f32.mrb[32].mxu0 }
 0x91e   :  { %v1270_v55 = vadd.f32 %v1325_v31, %v1269_v32  ;;  %v1361_v59 = vpop.f32.mrb[33].mxu0 }
 0x91f   :  { %v1272_v62 = vpop.f32.mrb[34].mxu0 }
 0x920   :  { %1275 = vst [vmem:[#allocation10] sm:$0xff] %v1270_v55  ;;  %v1362_v42 = vpop.f32.mrb[35].mxu0 }
 0x921   :  { %1646 = shalt.err (!%p1643_p8)
}
 0x922   :  { %s1647_s4 = scalar_lea.hbm %s2148_s5, 128 }
 0x923   :  { %p1648_p9 = scmp.ne.s32.totalorder %s2148_s5, %s1647_s4  ;;  %p1651_p10 = scmp.lt.u32.totalorder %s1647_s4, %s2148_s5 }
 0x925   :  { %p1653_p11 = pnand %p1651_p10, %p1648_p9 }
 0x927   :  { %1656 = shalt.err (!%p1653_p11)
}
 0x928   :  { %1285 = dma.vmem_to_hbm [thread:$0]  %s1283_s22, 128, %s2148_s5, [#allocation4]  }
 0x929   :  { %1663 = dma.done.wait [#allocation4], 128  }
 0x92a   :  { %1664 = vsyncadd [#allocation4], 4294967168 }
 0x92b   :  { %1289 = vsyncpa [#allocation3], 1 }
 0x92c   :  { %1290 = vsyncpa [#allocation6], 1 }
 0x92d   :  { %1291 = vsyncpa [#allocation9], 1 }
 0x92e   :  { %1292 = vsyncpa [#allocation4], 1 }

</bundles_post_ra>
